<compile_context>
chip_gen: v5e
topology: v5e:2x2
jax: 0.10.0
libtpu: 0.0.40
codegen_flags: <defaults>
</compile_context>

<pallas_src>
import functools

import numpy as np

import jax
import jax.numpy as jnp
from jax import lax
from jax.experimental import pallas as pl
from jax.experimental.pallas import tpu as pltpu

SUBLANE = 8  # f32 sublane tile height; batch is padded to a multiple of this


# ---------------------------------------------------------------------------
# Kernel
# ---------------------------------------------------------------------------
def _make_fused_kernel(num_layers, T, Tc, Bp, B, H, L, use_batch_stats):
    """Build the fused LSTM + BatchNorm1d + Linear kernel (static sizes baked in)."""
    nchunks = T // Tc
    # For H < 128, per-gate column slices give lane-sparse vregs -> pack the
    # activations full-width (2 EUP pushes) and select with a hoisted lane mask.
    wide_act = (H % 128) != 0

    def kernel(*refs):
        idx = 0
        x_ref = refs[idx]; idx += 1                              # (T*Bp, In) f32
        layer_refs = refs[idx: idx + 3 * num_layers]; idx += 3 * num_layers
        gamma_ref, beta_ref = refs[idx], refs[idx + 1]; idx += 2
        if not use_batch_stats:
            rmean_ref, rvar_ref = refs[idx], refs[idx + 1]; idx += 2
        wfc_ref, bfc_ref = refs[idx], refs[idx + 1]; idx += 2
        out_ref = refs[idx]; idx += 1                            # (B, L) f32
        xg_scr = refs[idx]; idx += 1                             # (Tc*Bp, 4H) f32
        hseq_scr = refs[idx] if num_layers > 1 else None         # (T*Bp, H) f32

        if wide_act:
            # Constant lane mask for the 'g' gate block; hoisted out of all loops.
            lane = lax.broadcasted_iota(jnp.int32, (Bp, 4 * H), 1)
            g_block = (lane >= 2 * H) & (lane < 3 * H)

        h = jnp.zeros((Bp, H), jnp.float32)
        c = jnp.zeros((Bp, H), jnp.float32)

        for layer in range(num_layers):
            wih_t = layer_refs[3 * layer][...]                   # (H_in, 4H) bf16, pre-transposed
            whh_t = layer_refs[3 * layer + 1][...]               # (H,    4H) bf16, pre-transposed
            bias = layer_refs[3 * layer + 2][...]                # (1,    4H) f32 = b_ih + b_hh
            last_layer = layer == num_layers - 1

            h = jnp.zeros((Bp, H), jnp.float32)
            c = jnp.zeros((Bp, H), jnp.float32)

            def run_chunk(row0, steps, h, c):
                nrows = steps * Bp
                # Hoisted input projection for this time-chunk: ONE tall bf16 MXU
                # matmul (f32 accumulate), bias folded in.  The serial recurrence
                # below then has a single (Bp,H)@(H,4H) MXU op per step.
                if layer == 0:
                    src = x_ref[pl.ds(row0, nrows), :].astype(jnp.bfloat16)
                else:
                    src = hseq_scr[pl.ds(row0, nrows), :].astype(jnp.bfloat16)
                xg_scr[pl.ds(0, nrows), :] = (
                    jnp.dot(src, wih_t, preferred_element_type=jnp.float32) + bias)

                def step(tl, carry):
                    h, c = carry
                    r = pl.multiple_of(tl * Bp, Bp)              # sublane-aligned slice
                    gates = xg_scr[pl.ds(r, Bp), :] + jnp.dot(
                        h.astype(jnp.bfloat16), whh_t,
                        preferred_element_type=jnp.float32)
                    # PyTorch gate order: i, f, g, o
                    if wide_act:
                        act = jnp.where(g_block, jnp.tanh(gates),
                                        jax.nn.sigmoid(gates))
                        i_g = act[:, 0 * H:1 * H]
                        f_g = act[:, 1 * H:2 * H]
                        g_g = act[:, 2 * H:3 * H]
                        o_g = act[:, 3 * H:4 * H]
                    else:
                        i_g = jax.nn.sigmoid(gates[:, 0 * H:1 * H])
                        f_g = jax.nn.sigmoid(gates[:, 1 * H:2 * H])
                        g_g = jnp.tanh(gates[:, 2 * H:3 * H])
                        o_g = jax.nn.sigmoid(gates[:, 3 * H:4 * H])
                    c_new = f_g * c + i_g * g_g
                    h_new = o_g * jnp.tanh(c_new)
                    if not last_layer:
                        # Intermediate layers feed the next layer's hoisted projection.
                        hseq_scr[pl.ds(row0 + r, Bp), :] = h_new
                    return h_new, c_new

                return lax.fori_loop(0, steps, step, (h, c),
                                     unroll=min(steps, 8))

            if nchunks == 1:
                h, c = run_chunk(0, T, h, c)
            else:
                def chunk_body(ci, carry):
                    h, c = carry
                    row0 = pl.multiple_of(ci * (Tc * Bp), Bp)
                    return run_chunk(row0, Tc, h, c)
                h, c = lax.fori_loop(0, nchunks, chunk_body, (h, c))
            # TODO(synk): inter-layer dropout (p=0.5, training mode) is stochastic; omitted.

        # ---- BatchNorm1d + Linear head on the last timestep's hidden state ----
        h_last = h[0:B, :]                                       # drop zero-padded batch rows
        if use_batch_stats:
            # training-mode BN: batch statistics, biased variance, eps=1e-5
            mean = jnp.mean(h_last, axis=0, keepdims=True)
            var = jnp.mean(jnp.square(h_last - mean), axis=0, keepdims=True)
        else:
            # eval-mode BN: running statistics passed in from the wrapper
            mean = rmean_ref[...]
            var = rvar_ref[...]
        h_norm = (h_last - mean) * lax.rsqrt(var + 1e-5)
        h_norm = h_norm * gamma_ref[...] + beta_ref[...]
        out_ref[...] = (
            jnp.dot(h_norm.astype(jnp.bfloat16), wfc_ref[...],
                    preferred_element_type=jnp.float32) + bfc_ref[...])

    return kernel


# ---------------------------------------------------------------------------
# Wrapper helpers
# ---------------------------------------------------------------------------
def _pick_time_chunk(T, target=32):
    """Largest chunk <= target dividing T; bounds the xg scratch to (Tc*Bp, 4H)."""
    if T <= target:
        return T
    best = 1
    for cand in range(target, 0, -1):
        if T % cand == 0:
            best = cand
            break
    # Degenerate divisors defeat the hoisted projection; fall back to unchunked.
    # TODO(synk): ragged last-chunk handling for awkward (prime) T.
    return best if best >= 8 else T


def _vmem_limit_bytes(T, Tc, Bp, In, H, L, num_layers, use_batch_stats):
    """Size the scoped-VMEM limit from the actual footprint, with a per-gen ceiling."""
    est = 2 * T * Bp * In * 4                                    # x input (double-buffered)
    for layer in range(num_layers):
        h_in = In if layer == 0 else H
        est += 2 * ((h_in + H) * 4 * H * 2 + 4 * H * 4)          # bf16 W_ih^T, W_hh^T + f32 bias
    est += 2 * (2 * H * 4 + H * L * 2 + L * 4)                   # gamma/beta, W_fc (bf16), b_fc
    if not use_batch_stats:
        est += 2 * 2 * H * 4                                     # running mean / var
    est += 2 * Bp * L * 4                                        # output
    est += Tc * Bp * 4 * H * 4                                   # chunked pre-activation scratch
    if num_layers > 1:
        est += T * Bp * H * 4                                    # inter-layer hidden sequence
    est = int(est * 1.25) + (4 << 20)                            # headroom for Mosaic internals
    try:
        cap = getattr(pltpu.get_tpu_info(), "vmem_capacity_bytes", None)
        ceiling = min(int(cap) * 7 // 8, 100 << 20) if cap else (56 << 20)
    except Exception:
        ceiling = 56 << 20                                       # safe on v5e/v6e/v7x
    return max(32 << 20, min(est, ceiling))


# ---------------------------------------------------------------------------
# Parameters (PyTorch layout / init ranges).
# ---------------------------------------------------------------------------
def make_params(key, input_size, hidden_size, num_layers, num_labels):
    params = {"layers": []}
    k = key
    scale = 1.0 / float(np.sqrt(hidden_size))
    for layer in range(num_layers):
        in_sz = input_size if layer == 0 else hidden_size
        k, k1, k2, k3, k4 = jax.random.split(k, 5)
        params["layers"].append({
            "w_ih": jax.random.uniform(k1, (4 * hidden_size, in_sz), jnp.float32, -scale, scale),
            "w_hh": jax.random.uniform(k2, (4 * hidden_size, hidden_size), jnp.float32, -scale, scale),
            "b_ih": jax.random.uniform(k3, (4 * hidden_size,), jnp.float32, -scale, scale),
            "b_hh": jax.random.uniform(k4, (4 * hidden_size,), jnp.float32, -scale, scale),
        })
    params["gamma"] = jnp.ones((hidden_size,), jnp.float32)      # BatchNorm1d affine init
    params["beta"] = jnp.zeros((hidden_size,), jnp.float32)
    params["running_mean"] = jnp.zeros((hidden_size,), jnp.float32)
    params["running_var"] = jnp.ones((hidden_size,), jnp.float32)
    k, k5, k6 = jax.random.split(k, 3)
    params["w_fc"] = jax.random.uniform(k5, (num_labels, hidden_size), jnp.float32, -scale, scale)
    params["b_fc"] = jax.random.uniform(k6, (num_labels,), jnp.float32, -scale, scale)
    return params


# ---------------------------------------------------------------------------
# Forward wrapper (mirrors the PyTorch module's forward, batch_first input).
# ---------------------------------------------------------------------------
@functools.partial(jax.jit, static_argnames=("use_batch_stats",))
def lstm_model_forward(params, x, use_batch_stats=True):
    """x: (B, T, input_size) float32. Returns (B, num_labels) float32."""
    B, T, In = x.shape
    H = params["layers"][0]["w_hh"].shape[1]
    L = params["w_fc"].shape[0]
    num_layers = len(params["layers"])
    Bp = ((B + SUBLANE - 1) // SUBLANE) * SUBLANE                # batch padded to sublane tile
    Tc = _pick_time_chunk(T)

    # time-major, batch-padded, flattened into a lane/sublane-friendly 2-D slab
    x_tm = jnp.transpose(x, (1, 0, 2)).astype(jnp.float32)       # (T, B, In)
    x_tm = jnp.pad(x_tm, ((0, 0), (0, Bp - B), (0, 0)))          # (T, Bp, In)
    x_flat = x_tm.reshape(T * Bp, In)

    args = [x_flat]
    in_specs = [pl.BlockSpec((T * Bp, In), lambda i: (0, 0))]
    for lp in params["layers"]:
        w_ih_t = lp["w_ih"].T.astype(jnp.bfloat16)               # (H_in, 4H) bf16 MXU operand
        w_hh_t = lp["w_hh"].T.astype(jnp.bfloat16)               # (H,    4H)
        bias = (lp["b_ih"] + lp["b_hh"]).reshape(1, 4 * H)       # combined f32 bias, folded once
        args += [w_ih_t, w_hh_t, bias]
        in_specs += [
            pl.BlockSpec(w_ih_t.shape, lambda i: (0, 0)),
            pl.BlockSpec(w_hh_t.shape, lambda i: (0, 0)),
            pl.BlockSpec((1, 4 * H), lambda i: (0, 0)),
        ]
    args += [params["gamma"].reshape(1, H), params["beta"].reshape(1, H)]
    in_specs += [pl.BlockSpec((1, H), lambda i: (0, 0))] * 2
    if not use_batch_stats:
        args += [params["running_mean"].reshape(1, H), params["running_var"].reshape(1, H)]
        in_specs += [pl.BlockSpec((1, H), lambda i: (0, 0))] * 2
    args += [params["w_fc"].T.astype(jnp.bfloat16), params["b_fc"].reshape(1, L)]
    in_specs += [pl.BlockSpec((H, L), lambda i: (0, 0)),
                 pl.BlockSpec((1, L), lambda i: (0, 0))]

    scratch = [pltpu.VMEM((Tc * Bp, 4 * H), jnp.float32)]        # chunked pre-activations
    if num_layers > 1:
        scratch.append(pltpu.VMEM((T * Bp, H), jnp.float32))     # inter-layer hidden sequence

    kernel = _make_fused_kernel(num_layers, T, Tc, Bp, B, H, L, use_batch_stats)

    return pl.pallas_call(
        kernel,
        out_shape=jax.ShapeDtypeStruct((B, L), jnp.float32),
        grid_spec=pltpu.PrefetchScalarGridSpec(
            num_scalar_prefetch=0,
            grid=(1,),
            in_specs=in_specs,
            out_specs=pl.BlockSpec((B, L), lambda i: (0, 0)),
            scratch_shapes=scratch,
        ),
        compiler_params=pltpu.CompilerParams(
            dimension_semantics=("arbitrary",),
            vmem_limit_bytes=_vmem_limit_bytes(
                T, Tc, Bp, In, H, L, num_layers, use_batch_stats)),
    )(*args)


# ---------------------------------------------------------------------------
# Pure-JAX reference with the same (bf16 matmul, f32 accumulate) precision.
# ---------------------------------------------------------------------------
def lstm_model_reference(params, x, use_batch_stats=True):
    B, T, In = x.shape
    H = params["layers"][0]["w_hh"].shape[1]
    seq = x.astype(jnp.float32)
    for lp in params["layers"]:
        w_ih_t = lp["w_ih"].T.astype(jnp.bfloat16)
        w_hh_t = lp["w_hh"].T.astype(jnp.bfloat16)
        b = (lp["b_ih"] + lp["b_hh"])[None, :]
        h = jnp.zeros((B, H), jnp.float32)
        c = jnp.zeros((B, H), jnp.float32)
        outs = []
        for t in range(T):
            g = (jnp.dot(seq[:, t, :].astype(jnp.bfloat16), w_ih_t,
                         preferred_element_type=jnp.float32)
                 + jnp.dot(h.astype(jnp.bfloat16), w_hh_t,
                           preferred_element_type=jnp.float32) + b)
            i_g = jax.nn.sigmoid(g[:, 0:H])
            f_g = jax.nn.sigmoid(g[:, H:2 * H])
            g_g = jnp.tanh(g[:, 2 * H:3 * H])
            o_g = jax.nn.sigmoid(g[:, 3 * H:4 * H])
            c = f_g * c + i_g * g_g
            h = o_g * jnp.tanh(c)
            outs.append(h)
        seq = jnp.stack(outs, axis=1)
    h_last = seq[:, -1, :]
    if use_batch_stats:
        mean = jnp.mean(h_last, axis=0, keepdims=True)
        var = jnp.mean(jnp.square(h_last - mean), axis=0, keepdims=True)
    else:
        mean = params["running_mean"][None, :]
        var = params["running_var"][None, :]
    h_norm = (h_last - mean) * lax.rsqrt(var + 1e-5)
    h_norm = h_norm * params["gamma"][None, :] + params["beta"][None, :]
    return (jnp.dot(h_norm.astype(jnp.bfloat16),
                    params["w_fc"].T.astype(jnp.bfloat16),
                    preferred_element_type=jnp.float32)
            + params["b_fc"][None, :])


if __name__ == "__main__":
    B, T = 4, 8
    input_size, hidden_size, num_layers, num_labels = 32, 32, 2, 8

    key = jax.random.PRNGKey(0)
    k_param, k_x = jax.random.split(key)
    params = make_params(k_param, input_size, hidden_size, num_layers, num_labels)
    x = jax.random.normal(k_x, (B, T, input_size), jnp.float32)

    out = lstm_model_forward(params, x)
    jax.block_until_ready(out)
    assert out.shape == (B, num_labels)
    assert bool(jnp.isfinite(out).all())

    ref = lstm_model_reference(params, x)
    np.testing.assert_allclose(np.asarray(out), np.asarray(ref), rtol=2e-2, atol=2e-2)
    print("KERNEL_OK")
</pallas_src>

<mosaic_0001>
module attributes {stable_mosaic.version = 11 : i64} {
  func.func @kernel(%arg0: i32, %arg1: memref<64x32xf32, #tpu.memory_space<vmem>>, %arg2: memref<32x128xbf16, #tpu.memory_space<vmem>>, %arg3: memref<32x128xbf16, #tpu.memory_space<vmem>>, %arg4: memref<1x128xf32, #tpu.memory_space<vmem>>, %arg5: memref<32x128xbf16, #tpu.memory_space<vmem>>, %arg6: memref<32x128xbf16, #tpu.memory_space<vmem>>, %arg7: memref<1x128xf32, #tpu.memory_space<vmem>>, %arg8: memref<1x32xf32, #tpu.memory_space<vmem>>, %arg9: memref<1x32xf32, #tpu.memory_space<vmem>>, %arg10: memref<32x8xbf16, #tpu.memory_space<vmem>>, %arg11: memref<1x8xf32, #tpu.memory_space<vmem>>, %arg12: memref<4x8xf32, #tpu.memory_space<vmem>>, %arg13: memref<64x128xf32, #tpu.memory_space<vmem>>, %arg14: memref<64x32xf32, #tpu.memory_space<vmem>>) attributes {dimension_semantics = [#tpu.dimension_semantics<arbitrary>], iteration_bounds = array<i64: 1>, scalar_prefetch = 0 : i64, scratch_operands = 2 : i64, tpu.core_type = #tpu.core_type<tc>, window_params = [{pipeline_mode = #tpu.pipeline_mode<synchronous>, transform_indices = @transform_0, window_bounds = array<i64: 64, 32>}, {pipeline_mode = #tpu.pipeline_mode<synchronous>, transform_indices = @transform_1, window_bounds = array<i64: 32, 128>}, {pipeline_mode = #tpu.pipeline_mode<synchronous>, transform_indices = @transform_2, window_bounds = array<i64: 32, 128>}, {pipeline_mode = #tpu.pipeline_mode<synchronous>, transform_indices = @transform_3, window_bounds = array<i64: 1, 128>}, {pipeline_mode = #tpu.pipeline_mode<synchronous>, transform_indices = @transform_4, window_bounds = array<i64: 32, 128>}, {pipeline_mode = #tpu.pipeline_mode<synchronous>, transform_indices = @transform_5, window_bounds = array<i64: 32, 128>}, {pipeline_mode = #tpu.pipeline_mode<synchronous>, transform_indices = @transform_6, window_bounds = array<i64: 1, 128>}, {pipeline_mode = #tpu.pipeline_mode<synchronous>, transform_indices = @transform_7, window_bounds = array<i64: 1, 32>}, {pipeline_mode = #tpu.pipeline_mode<synchronous>, transform_indices = @transform_8, window_bounds = array<i64: 1, 32>}, {pipeline_mode = #tpu.pipeline_mode<synchronous>, transform_indices = @transform_9, window_bounds = array<i64: 32, 8>}, {pipeline_mode = #tpu.pipeline_mode<synchronous>, transform_indices = @transform_10, window_bounds = array<i64: 1, 8>}, {pipeline_mode = #tpu.pipeline_mode<synchronous>, transform_indices = @transform_11, window_bounds = array<i64: 4, 8>}]} {
    %0 = tpu.iota {dimensions = array<i32: 1>} : vector<8x128xi32>
    %c64_i32 = arith.constant 64 : i32
    %1 = vector.broadcast %c64_i32 : i32 to vector<8x128xi32>
    %2 = arith.cmpi sge, %0, %1 : vector<8x128xi32>
    %c96_i32 = arith.constant 96 : i32
    %3 = vector.broadcast %c96_i32 : i32 to vector<8x128xi32>
    %4 = arith.cmpi slt, %0, %3 : vector<8x128xi32>
    %5 = arith.andi %2, %4 : vector<8x128xi1>
    %c0 = arith.constant 0 : index
    %c0_0 = arith.constant 0 : index
    %6 = vector.load %arg2[%c0, %c0_0] : memref<32x128xbf16, #tpu.memory_space<vmem>>, vector<32x128xbf16>
    %c0_1 = arith.constant 0 : index
    %c0_2 = arith.constant 0 : index
    %7 = vector.load %arg3[%c0_1, %c0_2] : memref<32x128xbf16, #tpu.memory_space<vmem>>, vector<32x128xbf16>
    %c0_3 = arith.constant 0 : index
    %c0_4 = arith.constant 0 : index
    %8 = vector.load %arg4[%c0_3, %c0_4] : memref<1x128xf32, #tpu.memory_space<vmem>>, vector<1x128xf32>
    %cst = arith.constant 0.000000e+00 : f32
    %9 = vector.broadcast %cst : f32 to vector<8x32xf32>
    %cst_5 = arith.constant 0.000000e+00 : f32
    %10 = vector.broadcast %cst_5 : f32 to vector<8x32xf32>
    %c0_6 = arith.constant 0 : index
    %c0_7 = arith.constant 0 : index
    %11 = vector.load %arg1[%c0_6, %c0_7] : memref<64x32xf32, #tpu.memory_space<vmem>>, vector<64x32xf32>
    %12 = arith.truncf %11 : vector<64x32xf32> to vector<64x32xbf16>
    %cst_8 = arith.constant dense<0.000000e+00> : vector<64x128xf32>
    %13 = tpu.matmul %12, %6, %cst_8 {dimension_numbers = #tpu.dot_dimension_numbers<[1], [0], [0], [1], [0, 0, 1, 1], [], []>} : vector<64x32xbf16>, vector<32x128xbf16>, vector<64x128xf32> -> vector<64x128xf32>
    %14 = vector.broadcast %8 : vector<1x128xf32> to vector<64x128xf32>
    %15 = arith.addf %13, %14 : vector<64x128xf32>
    %c0_9 = arith.constant 0 : index
    %c0_10 = arith.constant 0 : index
    %16 = vector.load %arg13[%c0_9, %c0_10] : memref<64x128xf32, #tpu.memory_space<vmem>>, vector<64x128xf32>
    tpu.vector_store %arg13[%c0_9, %c0_10], %15 {strides = array<i32>} : memref<64x128xf32, #tpu.memory_space<vmem>>, vector<64x128xf32>,
    %c0_i32 = arith.constant 0 : i32
    %c8_i32 = arith.constant 8 : i32
    %17 = arith.muli %c0_i32, %c8_i32 : i32
    %18 = tpu.assume_multiple %17, 8 : i32
    %19 = arith.index_cast %18 : i32 to index
    %c0_11 = arith.constant 0 : index
    %20 = vector.load %arg13[%19, %c0_11] : memref<64x128xf32, #tpu.memory_space<vmem>>, vector<8x128xf32>
    %21 = arith.truncf %9 : vector<8x32xf32> to vector<8x32xbf16>
    %cst_12 = arith.constant dense<0.000000e+00> : vector<8x128xf32>
    %22 = tpu.matmul %21, %7, %cst_12 {dimension_numbers = #tpu.dot_dimension_numbers<[1], [0], [0], [1], [0, 0, 1, 1], [], []>} : vector<8x32xbf16>, vector<32x128xbf16>, vector<8x128xf32> -> vector<8x128xf32>
    %23 = arith.addf %20, %22 : vector<8x128xf32>
    %24 = math.tanh %23 : vector<8x128xf32>
    %25 = arith.negf %23 : vector<8x128xf32>
    %26 = math.exp %25 : vector<8x128xf32>
    %cst_13 = arith.constant 1.000000e+00 : f32
    %27 = vector.broadcast %cst_13 : f32 to vector<8x128xf32>
    %28 = arith.addf %27, %26 : vector<8x128xf32>
    %29 = arith.divf %27, %28 : vector<8x128xf32>
    %30 = arith.select %5, %24, %29 : vector<8x128xi1>, vector<8x128xf32>
    %31 = vector.extract_strided_slice %30 {offsets = [0, 0], sizes = [8, 32], strides = [1, 1]} : vector<8x128xf32> to vector<8x32xf32>
    %32 = vector.extract_strided_slice %30 {offsets = [0, 32], sizes = [8, 32], strides = [1, 1]} : vector<8x128xf32> to vector<8x32xf32>
    %33 = vector.extract_strided_slice %30 {offsets = [0, 64], sizes = [8, 32], strides = [1, 1]} : vector<8x128xf32> to vector<8x32xf32>
    %34 = vector.extract_strided_slice %30 {offsets = [0, 96], sizes = [8, 32], strides = [1, 1]} : vector<8x128xf32> to vector<8x32xf32>
    %35 = arith.mulf %32, %10 : vector<8x32xf32>
    %36 = arith.mulf %31, %33 : vector<8x32xf32>
    %37 = arith.addf %35, %36 : vector<8x32xf32>
    %38 = math.tanh %37 : vector<8x32xf32>
    %39 = arith.mulf %34, %38 : vector<8x32xf32>
    %c0_i32_14 = arith.constant 0 : i32
    %40 = arith.addi %c0_i32_14, %18 : i32
    %41 = arith.index_cast %40 : i32 to index
    %c0_15 = arith.constant 0 : index
    %42 = vector.load %arg14[%41, %c0_15] : memref<64x32xf32, #tpu.memory_space<vmem>>, vector<8x32xf32>
    tpu.vector_store %arg14[%41, %c0_15], %39 {strides = array<i32>} : memref<64x32xf32, #tpu.memory_space<vmem>>, vector<8x32xf32>,
    %c1_i32 = arith.constant 1 : i32
    %c8_i32_16 = arith.constant 8 : i32
    %43 = arith.muli %c1_i32, %c8_i32_16 : i32
    %44 = tpu.assume_multiple %43, 8 : i32
    %45 = arith.index_cast %44 : i32 to index
    %c0_17 = arith.constant 0 : index
    %46 = vector.load %arg13[%45, %c0_17] : memref<64x128xf32, #tpu.memory_space<vmem>>, vector<8x128xf32>
    %47 = arith.truncf %39 : vector<8x32xf32> to vector<8x32xbf16>
    %cst_18 = arith.constant dense<0.000000e+00> : vector<8x128xf32>
    %48 = tpu.matmul %47, %7, %cst_18 {dimension_numbers = #tpu.dot_dimension_numbers<[1], [0], [0], [1], [0, 0, 1, 1], [], []>} : vector<8x32xbf16>, vector<32x128xbf16>, vector<8x128xf32> -> vector<8x128xf32>
    %49 = arith.addf %46, %48 : vector<8x128xf32>
    %50 = math.tanh %49 : vector<8x128xf32>
    %51 = arith.negf %49 : vector<8x128xf32>
    %52 = math.exp %51 : vector<8x128xf32>
    %cst_19 = arith.constant 1.000000e+00 : f32
    %53 = vector.broadcast %cst_19 : f32 to vector<8x128xf32>
    %54 = arith.addf %53, %52 : vector<8x128xf32>
    %55 = arith.divf %53, %54 : vector<8x128xf32>
    %56 = arith.select %5, %50, %55 : vector<8x128xi1>, vector<8x128xf32>
    %57 = vector.extract_strided_slice %56 {offsets = [0, 0], sizes = [8, 32], strides = [1, 1]} : vector<8x128xf32> to vector<8x32xf32>
    %58 = vector.extract_strided_slice %56 {offsets = [0, 32], sizes = [8, 32], strides = [1, 1]} : vector<8x128xf32> to vector<8x32xf32>
    %59 = vector.extract_strided_slice %56 {offsets = [0, 64], sizes = [8, 32], strides = [1, 1]} : vector<8x128xf32> to vector<8x32xf32>
    %60 = vector.extract_strided_slice %56 {offsets = [0, 96], sizes = [8, 32], strides = [1, 1]} : vector<8x128xf32> to vector<8x32xf32>
    %61 = arith.mulf %58, %37 : vector<8x32xf32>
    %62 = arith.mulf %57, %59 : vector<8x32xf32>
    %63 = arith.addf %61, %62 : vector<8x32xf32>
    %64 = math.tanh %63 : vector<8x32xf32>
    %65 = arith.mulf %60, %64 : vector<8x32xf32>
    %c0_i32_20 = arith.constant 0 : i32
    %66 = arith.addi %c0_i32_20, %44 : i32
    %67 = arith.index_cast %66 : i32 to index
    %c0_21 = arith.constant 0 : index
    %68 = vector.load %arg14[%67, %c0_21] : memref<64x32xf32, #tpu.memory_space<vmem>>, vector<8x32xf32>
    tpu.vector_store %arg14[%67, %c0_21], %65 {strides = array<i32>} : memref<64x32xf32, #tpu.memory_space<vmem>>, vector<8x32xf32>,
    %c2_i32 = arith.constant 2 : i32
    %c8_i32_22 = arith.constant 8 : i32
    %69 = arith.muli %c2_i32, %c8_i32_22 : i32
    %70 = tpu.assume_multiple %69, 8 : i32
    %71 = arith.index_cast %70 : i32 to index
    %c0_23 = arith.constant 0 : index
    %72 = vector.load %arg13[%71, %c0_23] : memref<64x128xf32, #tpu.memory_space<vmem>>, vector<8x128xf32>
    %73 = arith.truncf %65 : vector<8x32xf32> to vector<8x32xbf16>
    %cst_24 = arith.constant dense<0.000000e+00> : vector<8x128xf32>
    %74 = tpu.matmul %73, %7, %cst_24 {dimension_numbers = #tpu.dot_dimension_numbers<[1], [0], [0], [1], [0, 0, 1, 1], [], []>} : vector<8x32xbf16>, vector<32x128xbf16>, vector<8x128xf32> -> vector<8x128xf32>
    %75 = arith.addf %72, %74 : vector<8x128xf32>
    %76 = math.tanh %75 : vector<8x128xf32>
    %77 = arith.negf %75 : vector<8x128xf32>
    %78 = math.exp %77 : vector<8x128xf32>
    %cst_25 = arith.constant 1.000000e+00 : f32
    %79 = vector.broadcast %cst_25 : f32 to vector<8x128xf32>
    %80 = arith.addf %79, %78 : vector<8x128xf32>
    %81 = arith.divf %79, %80 : vector<8x128xf32>
    %82 = arith.select %5, %76, %81 : vector<8x128xi1>, vector<8x128xf32>
    %83 = vector.extract_strided_slice %82 {offsets = [0, 0], sizes = [8, 32], strides = [1, 1]} : vector<8x128xf32> to vector<8x32xf32>
    %84 = vector.extract_strided_slice %82 {offsets = [0, 32], sizes = [8, 32], strides = [1, 1]} : vector<8x128xf32> to vector<8x32xf32>
    %85 = vector.extract_strided_slice %82 {offsets = [0, 64], sizes = [8, 32], strides = [1, 1]} : vector<8x128xf32> to vector<8x32xf32>
    %86 = vector.extract_strided_slice %82 {offsets = [0, 96], sizes = [8, 32], strides = [1, 1]} : vector<8x128xf32> to vector<8x32xf32>
    %87 = arith.mulf %84, %63 : vector<8x32xf32>
    %88 = arith.mulf %83, %85 : vector<8x32xf32>
    %89 = arith.addf %87, %88 : vector<8x32xf32>
    %90 = math.tanh %89 : vector<8x32xf32>
    %91 = arith.mulf %86, %90 : vector<8x32xf32>
    %c0_i32_26 = arith.constant 0 : i32
    %92 = arith.addi %c0_i32_26, %70 : i32
    %93 = arith.index_cast %92 : i32 to index
    %c0_27 = arith.constant 0 : index
    %94 = vector.load %arg14[%93, %c0_27] : memref<64x32xf32, #tpu.memory_space<vmem>>, vector<8x32xf32>
    tpu.vector_store %arg14[%93, %c0_27], %91 {strides = array<i32>} : memref<64x32xf32, #tpu.memory_space<vmem>>, vector<8x32xf32>,
    %c3_i32 = arith.constant 3 : i32
    %c8_i32_28 = arith.constant 8 : i32
    %95 = arith.muli %c3_i32, %c8_i32_28 : i32
    %96 = tpu.assume_multiple %95, 8 : i32
    %97 = arith.index_cast %96 : i32 to index
    %c0_29 = arith.constant 0 : index
    %98 = vector.load %arg13[%97, %c0_29] : memref<64x128xf32, #tpu.memory_space<vmem>>, vector<8x128xf32>
    %99 = arith.truncf %91 : vector<8x32xf32> to vector<8x32xbf16>
    %cst_30 = arith.constant dense<0.000000e+00> : vector<8x128xf32>
    %100 = tpu.matmul %99, %7, %cst_30 {dimension_numbers = #tpu.dot_dimension_numbers<[1], [0], [0], [1], [0, 0, 1, 1], [], []>} : vector<8x32xbf16>, vector<32x128xbf16>, vector<8x128xf32> -> vector<8x128xf32>
    %101 = arith.addf %98, %100 : vector<8x128xf32>
    %102 = math.tanh %101 : vector<8x128xf32>
    %103 = arith.negf %101 : vector<8x128xf32>
    %104 = math.exp %103 : vector<8x128xf32>
    %cst_31 = arith.constant 1.000000e+00 : f32
    %105 = vector.broadcast %cst_31 : f32 to vector<8x128xf32>
    %106 = arith.addf %105, %104 : vector<8x128xf32>
    %107 = arith.divf %105, %106 : vector<8x128xf32>
    %108 = arith.select %5, %102, %107 : vector<8x128xi1>, vector<8x128xf32>
    %109 = vector.extract_strided_slice %108 {offsets = [0, 0], sizes = [8, 32], strides = [1, 1]} : vector<8x128xf32> to vector<8x32xf32>
    %110 = vector.extract_strided_slice %108 {offsets = [0, 32], sizes = [8, 32], strides = [1, 1]} : vector<8x128xf32> to vector<8x32xf32>
    %111 = vector.extract_strided_slice %108 {offsets = [0, 64], sizes = [8, 32], strides = [1, 1]} : vector<8x128xf32> to vector<8x32xf32>
    %112 = vector.extract_strided_slice %108 {offsets = [0, 96], sizes = [8, 32], strides = [1, 1]} : vector<8x128xf32> to vector<8x32xf32>
    %113 = arith.mulf %110, %89 : vector<8x32xf32>
    %114 = arith.mulf %109, %111 : vector<8x32xf32>
    %115 = arith.addf %113, %114 : vector<8x32xf32>
    %116 = math.tanh %115 : vector<8x32xf32>
    %117 = arith.mulf %112, %116 : vector<8x32xf32>
    %c0_i32_32 = arith.constant 0 : i32
    %118 = arith.addi %c0_i32_32, %96 : i32
    %119 = arith.index_cast %118 : i32 to index
    %c0_33 = arith.constant 0 : index
    %120 = vector.load %arg14[%119, %c0_33] : memref<64x32xf32, #tpu.memory_space<vmem>>, vector<8x32xf32>
    tpu.vector_store %arg14[%119, %c0_33], %117 {strides = array<i32>} : memref<64x32xf32, #tpu.memory_space<vmem>>, vector<8x32xf32>,
    %c4_i32 = arith.constant 4 : i32
    %c8_i32_34 = arith.constant 8 : i32
    %121 = arith.muli %c4_i32, %c8_i32_34 : i32
    %122 = tpu.assume_multiple %121, 8 : i32
    %123 = arith.index_cast %122 : i32 to index
    %c0_35 = arith.constant 0 : index
    %124 = vector.load %arg13[%123, %c0_35] : memref<64x128xf32, #tpu.memory_space<vmem>>, vector<8x128xf32>
    %125 = arith.truncf %117 : vector<8x32xf32> to vector<8x32xbf16>
    %cst_36 = arith.constant dense<0.000000e+00> : vector<8x128xf32>
    %126 = tpu.matmul %125, %7, %cst_36 {dimension_numbers = #tpu.dot_dimension_numbers<[1], [0], [0], [1], [0, 0, 1, 1], [], []>} : vector<8x32xbf16>, vector<32x128xbf16>, vector<8x128xf32> -> vector<8x128xf32>
    %127 = arith.addf %124, %126 : vector<8x128xf32>
    %128 = math.tanh %127 : vector<8x128xf32>
    %129 = arith.negf %127 : vector<8x128xf32>
    %130 = math.exp %129 : vector<8x128xf32>
    %cst_37 = arith.constant 1.000000e+00 : f32
    %131 = vector.broadcast %cst_37 : f32 to vector<8x128xf32>
    %132 = arith.addf %131, %130 : vector<8x128xf32>
    %133 = arith.divf %131, %132 : vector<8x128xf32>
    %134 = arith.select %5, %128, %133 : vector<8x128xi1>, vector<8x128xf32>
    %135 = vector.extract_strided_slice %134 {offsets = [0, 0], sizes = [8, 32], strides = [1, 1]} : vector<8x128xf32> to vector<8x32xf32>
    %136 = vector.extract_strided_slice %134 {offsets = [0, 32], sizes = [8, 32], strides = [1, 1]} : vector<8x128xf32> to vector<8x32xf32>
    %137 = vector.extract_strided_slice %134 {offsets = [0, 64], sizes = [8, 32], strides = [1, 1]} : vector<8x128xf32> to vector<8x32xf32>
    %138 = vector.extract_strided_slice %134 {offsets = [0, 96], sizes = [8, 32], strides = [1, 1]} : vector<8x128xf32> to vector<8x32xf32>
    %139 = arith.mulf %136, %115 : vector<8x32xf32>
    %140 = arith.mulf %135, %137 : vector<8x32xf32>
    %141 = arith.addf %139, %140 : vector<8x32xf32>
    %142 = math.tanh %141 : vector<8x32xf32>
    %143 = arith.mulf %138, %142 : vector<8x32xf32>
    %c0_i32_38 = arith.constant 0 : i32
    %144 = arith.addi %c0_i32_38, %122 : i32
    %145 = arith.index_cast %144 : i32 to index
    %c0_39 = arith.constant 0 : index
    %146 = vector.load %arg14[%145, %c0_39] : memref<64x32xf32, #tpu.memory_space<vmem>>, vector<8x32xf32>
    tpu.vector_store %arg14[%145, %c0_39], %143 {strides = array<i32>} : memref<64x32xf32, #tpu.memory_space<vmem>>, vector<8x32xf32>,
    %c5_i32 = arith.constant 5 : i32
    %c8_i32_40 = arith.constant 8 : i32
    %147 = arith.muli %c5_i32, %c8_i32_40 : i32
    %148 = tpu.assume_multiple %147, 8 : i32
    %149 = arith.index_cast %148 : i32 to index
    %c0_41 = arith.constant 0 : index
    %150 = vector.load %arg13[%149, %c0_41] : memref<64x128xf32, #tpu.memory_space<vmem>>, vector<8x128xf32>
    %151 = arith.truncf %143 : vector<8x32xf32> to vector<8x32xbf16>
    %cst_42 = arith.constant dense<0.000000e+00> : vector<8x128xf32>
    %152 = tpu.matmul %151, %7, %cst_42 {dimension_numbers = #tpu.dot_dimension_numbers<[1], [0], [0], [1], [0, 0, 1, 1], [], []>} : vector<8x32xbf16>, vector<32x128xbf16>, vector<8x128xf32> -> vector<8x128xf32>
    %153 = arith.addf %150, %152 : vector<8x128xf32>
    %154 = math.tanh %153 : vector<8x128xf32>
    %155 = arith.negf %153 : vector<8x128xf32>
    %156 = math.exp %155 : vector<8x128xf32>
    %cst_43 = arith.constant 1.000000e+00 : f32
    %157 = vector.broadcast %cst_43 : f32 to vector<8x128xf32>
    %158 = arith.addf %157, %156 : vector<8x128xf32>
    %159 = arith.divf %157, %158 : vector<8x128xf32>
    %160 = arith.select %5, %154, %159 : vector<8x128xi1>, vector<8x128xf32>
    %161 = vector.extract_strided_slice %160 {offsets = [0, 0], sizes = [8, 32], strides = [1, 1]} : vector<8x128xf32> to vector<8x32xf32>
    %162 = vector.extract_strided_slice %160 {offsets = [0, 32], sizes = [8, 32], strides = [1, 1]} : vector<8x128xf32> to vector<8x32xf32>
    %163 = vector.extract_strided_slice %160 {offsets = [0, 64], sizes = [8, 32], strides = [1, 1]} : vector<8x128xf32> to vector<8x32xf32>
    %164 = vector.extract_strided_slice %160 {offsets = [0, 96], sizes = [8, 32], strides = [1, 1]} : vector<8x128xf32> to vector<8x32xf32>
    %165 = arith.mulf %162, %141 : vector<8x32xf32>
    %166 = arith.mulf %161, %163 : vector<8x32xf32>
    %167 = arith.addf %165, %166 : vector<8x32xf32>
    %168 = math.tanh %167 : vector<8x32xf32>
    %169 = arith.mulf %164, %168 : vector<8x32xf32>
    %c0_i32_44 = arith.constant 0 : i32
    %170 = arith.addi %c0_i32_44, %148 : i32
    %171 = arith.index_cast %170 : i32 to index
    %c0_45 = arith.constant 0 : index
    %172 = vector.load %arg14[%171, %c0_45] : memref<64x32xf32, #tpu.memory_space<vmem>>, vector<8x32xf32>
    tpu.vector_store %arg14[%171, %c0_45], %169 {strides = array<i32>} : memref<64x32xf32, #tpu.memory_space<vmem>>, vector<8x32xf32>,
    %c6_i32 = arith.constant 6 : i32
    %c8_i32_46 = arith.constant 8 : i32
    %173 = arith.muli %c6_i32, %c8_i32_46 : i32
    %174 = tpu.assume_multiple %173, 8 : i32
    %175 = arith.index_cast %174 : i32 to index
    %c0_47 = arith.constant 0 : index
    %176 = vector.load %arg13[%175, %c0_47] : memref<64x128xf32, #tpu.memory_space<vmem>>, vector<8x128xf32>
    %177 = arith.truncf %169 : vector<8x32xf32> to vector<8x32xbf16>
    %cst_48 = arith.constant dense<0.000000e+00> : vector<8x128xf32>
    %178 = tpu.matmul %177, %7, %cst_48 {dimension_numbers = #tpu.dot_dimension_numbers<[1], [0], [0], [1], [0, 0, 1, 1], [], []>} : vector<8x32xbf16>, vector<32x128xbf16>, vector<8x128xf32> -> vector<8x128xf32>
    %179 = arith.addf %176, %178 : vector<8x128xf32>
    %180 = math.tanh %179 : vector<8x128xf32>
    %181 = arith.negf %179 : vector<8x128xf32>
    %182 = math.exp %181 : vector<8x128xf32>
    %cst_49 = arith.constant 1.000000e+00 : f32
    %183 = vector.broadcast %cst_49 : f32 to vector<8x128xf32>
    %184 = arith.addf %183, %182 : vector<8x128xf32>
    %185 = arith.divf %183, %184 : vector<8x128xf32>
    %186 = arith.select %5, %180, %185 : vector<8x128xi1>, vector<8x128xf32>
    %187 = vector.extract_strided_slice %186 {offsets = [0, 0], sizes = [8, 32], strides = [1, 1]} : vector<8x128xf32> to vector<8x32xf32>
    %188 = vector.extract_strided_slice %186 {offsets = [0, 32], sizes = [8, 32], strides = [1, 1]} : vector<8x128xf32> to vector<8x32xf32>
    %189 = vector.extract_strided_slice %186 {offsets = [0, 64], sizes = [8, 32], strides = [1, 1]} : vector<8x128xf32> to vector<8x32xf32>
    %190 = vector.extract_strided_slice %186 {offsets = [0, 96], sizes = [8, 32], strides = [1, 1]} : vector<8x128xf32> to vector<8x32xf32>
    %191 = arith.mulf %188, %167 : vector<8x32xf32>
    %192 = arith.mulf %187, %189 : vector<8x32xf32>
    %193 = arith.addf %191, %192 : vector<8x32xf32>
    %194 = math.tanh %193 : vector<8x32xf32>
    %195 = arith.mulf %190, %194 : vector<8x32xf32>
    %c0_i32_50 = arith.constant 0 : i32
    %196 = arith.addi %c0_i32_50, %174 : i32
    %197 = arith.index_cast %196 : i32 to index
    %c0_51 = arith.constant 0 : index
    %198 = vector.load %arg14[%197, %c0_51] : memref<64x32xf32, #tpu.memory_space<vmem>>, vector<8x32xf32>
    tpu.vector_store %arg14[%197, %c0_51], %195 {strides = array<i32>} : memref<64x32xf32, #tpu.memory_space<vmem>>, vector<8x32xf32>,
    %c7_i32 = arith.constant 7 : i32
    %c8_i32_52 = arith.constant 8 : i32
    %199 = arith.muli %c7_i32, %c8_i32_52 : i32
    %200 = tpu.assume_multiple %199, 8 : i32
    %201 = arith.index_cast %200 : i32 to index
    %c0_53 = arith.constant 0 : index
    %202 = vector.load %arg13[%201, %c0_53] : memref<64x128xf32, #tpu.memory_space<vmem>>, vector<8x128xf32>
    %203 = arith.truncf %195 : vector<8x32xf32> to vector<8x32xbf16>
    %cst_54 = arith.constant dense<0.000000e+00> : vector<8x128xf32>
    %204 = tpu.matmul %203, %7, %cst_54 {dimension_numbers = #tpu.dot_dimension_numbers<[1], [0], [0], [1], [0, 0, 1, 1], [], []>} : vector<8x32xbf16>, vector<32x128xbf16>, vector<8x128xf32> -> vector<8x128xf32>
    %205 = arith.addf %202, %204 : vector<8x128xf32>
    %206 = math.tanh %205 : vector<8x128xf32>
    %207 = arith.negf %205 : vector<8x128xf32>
    %208 = math.exp %207 : vector<8x128xf32>
    %cst_55 = arith.constant 1.000000e+00 : f32
    %209 = vector.broadcast %cst_55 : f32 to vector<8x128xf32>
    %210 = arith.addf %209, %208 : vector<8x128xf32>
    %211 = arith.divf %209, %210 : vector<8x128xf32>
    %212 = arith.select %5, %206, %211 : vector<8x128xi1>, vector<8x128xf32>
    %213 = vector.extract_strided_slice %212 {offsets = [0, 0], sizes = [8, 32], strides = [1, 1]} : vector<8x128xf32> to vector<8x32xf32>
    %214 = vector.extract_strided_slice %212 {offsets = [0, 32], sizes = [8, 32], strides = [1, 1]} : vector<8x128xf32> to vector<8x32xf32>
    %215 = vector.extract_strided_slice %212 {offsets = [0, 64], sizes = [8, 32], strides = [1, 1]} : vector<8x128xf32> to vector<8x32xf32>
    %216 = vector.extract_strided_slice %212 {offsets = [0, 96], sizes = [8, 32], strides = [1, 1]} : vector<8x128xf32> to vector<8x32xf32>
    %217 = arith.mulf %214, %193 : vector<8x32xf32>
    %218 = arith.mulf %213, %215 : vector<8x32xf32>
    %219 = arith.addf %217, %218 : vector<8x32xf32>
    %220 = math.tanh %219 : vector<8x32xf32>
    %221 = arith.mulf %216, %220 : vector<8x32xf32>
    %c0_i32_56 = arith.constant 0 : i32
    %222 = arith.addi %c0_i32_56, %200 : i32
    %223 = arith.index_cast %222 : i32 to index
    %c0_57 = arith.constant 0 : index
    %224 = vector.load %arg14[%223, %c0_57] : memref<64x32xf32, #tpu.memory_space<vmem>>, vector<8x32xf32>
    tpu.vector_store %arg14[%223, %c0_57], %221 {strides = array<i32>} : memref<64x32xf32, #tpu.memory_space<vmem>>, vector<8x32xf32>,
    %c8_i32_58 = arith.constant 8 : i32
    %c0_59 = arith.constant 0 : index
    %c0_60 = arith.constant 0 : index
    %225 = vector.load %arg5[%c0_59, %c0_60] : memref<32x128xbf16, #tpu.memory_space<vmem>>, vector<32x128xbf16>
    %c0_61 = arith.constant 0 : index
    %c0_62 = arith.constant 0 : index
    %226 = vector.load %arg6[%c0_61, %c0_62] : memref<32x128xbf16, #tpu.memory_space<vmem>>, vector<32x128xbf16>
    %c0_63 = arith.constant 0 : index
    %c0_64 = arith.constant 0 : index
    %227 = vector.load %arg7[%c0_63, %c0_64] : memref<1x128xf32, #tpu.memory_space<vmem>>, vector<1x128xf32>
    %cst_65 = arith.constant 0.000000e+00 : f32
    %228 = vector.broadcast %cst_65 : f32 to vector<8x32xf32>
    %cst_66 = arith.constant 0.000000e+00 : f32
    %229 = vector.broadcast %cst_66 : f32 to vector<8x32xf32>
    %c0_67 = arith.constant 0 : index
    %c0_68 = arith.constant 0 : index
    %230 = vector.load %arg14[%c0_67, %c0_68] : memref<64x32xf32, #tpu.memory_space<vmem>>, vector<64x32xf32>
    %231 = arith.truncf %230 : vector<64x32xf32> to vector<64x32xbf16>
    %cst_69 = arith.constant dense<0.000000e+00> : vector<64x128xf32>
    %232 = tpu.matmul %231, %225, %cst_69 {dimension_numbers = #tpu.dot_dimension_numbers<[1], [0], [0], [1], [0, 0, 1, 1], [], []>} : vector<64x32xbf16>, vector<32x128xbf16>, vector<64x128xf32> -> vector<64x128xf32>
    %233 = vector.broadcast %227 : vector<1x128xf32> to vector<64x128xf32>
    %234 = arith.addf %232, %233 : vector<64x128xf32>
    %c0_70 = arith.constant 0 : index
    %c0_71 = arith.constant 0 : index
    %235 = vector.load %arg13[%c0_70, %c0_71] : memref<64x128xf32, #tpu.memory_space<vmem>>, vector<64x128xf32>
    tpu.vector_store %arg13[%c0_70, %c0_71], %234 {strides = array<i32>} : memref<64x128xf32, #tpu.memory_space<vmem>>, vector<64x128xf32>,
    %c0_i32_72 = arith.constant 0 : i32
    %c8_i32_73 = arith.constant 8 : i32
    %236 = arith.muli %c0_i32_72, %c8_i32_73 : i32
    %237 = tpu.assume_multiple %236, 8 : i32
    %238 = arith.index_cast %237 : i32 to index
    %c0_74 = arith.constant 0 : index
    %239 = vector.load %arg13[%238, %c0_74] : memref<64x128xf32, #tpu.memory_space<vmem>>, vector<8x128xf32>
    %240 = arith.truncf %228 : vector<8x32xf32> to vector<8x32xbf16>
    %cst_75 = arith.constant dense<0.000000e+00> : vector<8x128xf32>
    %241 = tpu.matmul %240, %226, %cst_75 {dimension_numbers = #tpu.dot_dimension_numbers<[1], [0], [0], [1], [0, 0, 1, 1], [], []>} : vector<8x32xbf16>, vector<32x128xbf16>, vector<8x128xf32> -> vector<8x128xf32>
    %242 = arith.addf %239, %241 : vector<8x128xf32>
    %243 = math.tanh %242 : vector<8x128xf32>
    %244 = arith.negf %242 : vector<8x128xf32>
    %245 = math.exp %244 : vector<8x128xf32>
    %cst_76 = arith.constant 1.000000e+00 : f32
    %246 = vector.broadcast %cst_76 : f32 to vector<8x128xf32>
    %247 = arith.addf %246, %245 : vector<8x128xf32>
    %248 = arith.divf %246, %247 : vector<8x128xf32>
    %249 = arith.select %5, %243, %248 : vector<8x128xi1>, vector<8x128xf32>
    %250 = vector.extract_strided_slice %249 {offsets = [0, 0], sizes = [8, 32], strides = [1, 1]} : vector<8x128xf32> to vector<8x32xf32>
    %251 = vector.extract_strided_slice %249 {offsets = [0, 32], sizes = [8, 32], strides = [1, 1]} : vector<8x128xf32> to vector<8x32xf32>
    %252 = vector.extract_strided_slice %249 {offsets = [0, 64], sizes = [8, 32], strides = [1, 1]} : vector<8x128xf32> to vector<8x32xf32>
    %253 = vector.extract_strided_slice %249 {offsets = [0, 96], sizes = [8, 32], strides = [1, 1]} : vector<8x128xf32> to vector<8x32xf32>
    %254 = arith.mulf %251, %229 : vector<8x32xf32>
    %255 = arith.mulf %250, %252 : vector<8x32xf32>
    %256 = arith.addf %254, %255 : vector<8x32xf32>
    %257 = math.tanh %256 : vector<8x32xf32>
    %258 = arith.mulf %253, %257 : vector<8x32xf32>
    %c1_i32_77 = arith.constant 1 : i32
    %c8_i32_78 = arith.constant 8 : i32
    %259 = arith.muli %c1_i32_77, %c8_i32_78 : i32
    %260 = tpu.assume_multiple %259, 8 : i32
    %261 = arith.index_cast %260 : i32 to index
    %c0_79 = arith.constant 0 : index
    %262 = vector.load %arg13[%261, %c0_79] : memref<64x128xf32, #tpu.memory_space<vmem>>, vector<8x128xf32>
    %263 = arith.truncf %258 : vector<8x32xf32> to vector<8x32xbf16>
    %cst_80 = arith.constant dense<0.000000e+00> : vector<8x128xf32>
    %264 = tpu.matmul %263, %226, %cst_80 {dimension_numbers = #tpu.dot_dimension_numbers<[1], [0], [0], [1], [0, 0, 1, 1], [], []>} : vector<8x32xbf16>, vector<32x128xbf16>, vector<8x128xf32> -> vector<8x128xf32>
    %265 = arith.addf %262, %264 : vector<8x128xf32>
    %266 = math.tanh %265 : vector<8x128xf32>
    %267 = arith.negf %265 : vector<8x128xf32>
    %268 = math.exp %267 : vector<8x128xf32>
    %cst_81 = arith.constant 1.000000e+00 : f32
    %269 = vector.broadcast %cst_81 : f32 to vector<8x128xf32>
    %270 = arith.addf %269, %268 : vector<8x128xf32>
    %271 = arith.divf %269, %270 : vector<8x128xf32>
    %272 = arith.select %5, %266, %271 : vector<8x128xi1>, vector<8x128xf32>
    %273 = vector.extract_strided_slice %272 {offsets = [0, 0], sizes = [8, 32], strides = [1, 1]} : vector<8x128xf32> to vector<8x32xf32>
    %274 = vector.extract_strided_slice %272 {offsets = [0, 32], sizes = [8, 32], strides = [1, 1]} : vector<8x128xf32> to vector<8x32xf32>
    %275 = vector.extract_strided_slice %272 {offsets = [0, 64], sizes = [8, 32], strides = [1, 1]} : vector<8x128xf32> to vector<8x32xf32>
    %276 = vector.extract_strided_slice %272 {offsets = [0, 96], sizes = [8, 32], strides = [1, 1]} : vector<8x128xf32> to vector<8x32xf32>
    %277 = arith.mulf %274, %256 : vector<8x32xf32>
    %278 = arith.mulf %273, %275 : vector<8x32xf32>
    %279 = arith.addf %277, %278 : vector<8x32xf32>
    %280 = math.tanh %279 : vector<8x32xf32>
    %281 = arith.mulf %276, %280 : vector<8x32xf32>
    %c2_i32_82 = arith.constant 2 : i32
    %c8_i32_83 = arith.constant 8 : i32
    %282 = arith.muli %c2_i32_82, %c8_i32_83 : i32
    %283 = tpu.assume_multiple %282, 8 : i32
    %284 = arith.index_cast %283 : i32 to index
    %c0_84 = arith.constant 0 : index
    %285 = vector.load %arg13[%284, %c0_84] : memref<64x128xf32, #tpu.memory_space<vmem>>, vector<8x128xf32>
    %286 = arith.truncf %281 : vector<8x32xf32> to vector<8x32xbf16>
    %cst_85 = arith.constant dense<0.000000e+00> : vector<8x128xf32>
    %287 = tpu.matmul %286, %226, %cst_85 {dimension_numbers = #tpu.dot_dimension_numbers<[1], [0], [0], [1], [0, 0, 1, 1], [], []>} : vector<8x32xbf16>, vector<32x128xbf16>, vector<8x128xf32> -> vector<8x128xf32>
    %288 = arith.addf %285, %287 : vector<8x128xf32>
    %289 = math.tanh %288 : vector<8x128xf32>
    %290 = arith.negf %288 : vector<8x128xf32>
    %291 = math.exp %290 : vector<8x128xf32>
    %cst_86 = arith.constant 1.000000e+00 : f32
    %292 = vector.broadcast %cst_86 : f32 to vector<8x128xf32>
    %293 = arith.addf %292, %291 : vector<8x128xf32>
    %294 = arith.divf %292, %293 : vector<8x128xf32>
    %295 = arith.select %5, %289, %294 : vector<8x128xi1>, vector<8x128xf32>
    %296 = vector.extract_strided_slice %295 {offsets = [0, 0], sizes = [8, 32], strides = [1, 1]} : vector<8x128xf32> to vector<8x32xf32>
    %297 = vector.extract_strided_slice %295 {offsets = [0, 32], sizes = [8, 32], strides = [1, 1]} : vector<8x128xf32> to vector<8x32xf32>
    %298 = vector.extract_strided_slice %295 {offsets = [0, 64], sizes = [8, 32], strides = [1, 1]} : vector<8x128xf32> to vector<8x32xf32>
    %299 = vector.extract_strided_slice %295 {offsets = [0, 96], sizes = [8, 32], strides = [1, 1]} : vector<8x128xf32> to vector<8x32xf32>
    %300 = arith.mulf %297, %279 : vector<8x32xf32>
    %301 = arith.mulf %296, %298 : vector<8x32xf32>
    %302 = arith.addf %300, %301 : vector<8x32xf32>
    %303 = math.tanh %302 : vector<8x32xf32>
    %304 = arith.mulf %299, %303 : vector<8x32xf32>
    %c3_i32_87 = arith.constant 3 : i32
    %c8_i32_88 = arith.constant 8 : i32
    %305 = arith.muli %c3_i32_87, %c8_i32_88 : i32
    %306 = tpu.assume_multiple %305, 8 : i32
    %307 = arith.index_cast %306 : i32 to index
    %c0_89 = arith.constant 0 : index
    %308 = vector.load %arg13[%307, %c0_89] : memref<64x128xf32, #tpu.memory_space<vmem>>, vector<8x128xf32>
    %309 = arith.truncf %304 : vector<8x32xf32> to vector<8x32xbf16>
    %cst_90 = arith.constant dense<0.000000e+00> : vector<8x128xf32>
    %310 = tpu.matmul %309, %226, %cst_90 {dimension_numbers = #tpu.dot_dimension_numbers<[1], [0], [0], [1], [0, 0, 1, 1], [], []>} : vector<8x32xbf16>, vector<32x128xbf16>, vector<8x128xf32> -> vector<8x128xf32>
    %311 = arith.addf %308, %310 : vector<8x128xf32>
    %312 = math.tanh %311 : vector<8x128xf32>
    %313 = arith.negf %311 : vector<8x128xf32>
    %314 = math.exp %313 : vector<8x128xf32>
    %cst_91 = arith.constant 1.000000e+00 : f32
    %315 = vector.broadcast %cst_91 : f32 to vector<8x128xf32>
    %316 = arith.addf %315, %314 : vector<8x128xf32>
    %317 = arith.divf %315, %316 : vector<8x128xf32>
    %318 = arith.select %5, %312, %317 : vector<8x128xi1>, vector<8x128xf32>
    %319 = vector.extract_strided_slice %318 {offsets = [0, 0], sizes = [8, 32], strides = [1, 1]} : vector<8x128xf32> to vector<8x32xf32>
    %320 = vector.extract_strided_slice %318 {offsets = [0, 32], sizes = [8, 32], strides = [1, 1]} : vector<8x128xf32> to vector<8x32xf32>
    %321 = vector.extract_strided_slice %318 {offsets = [0, 64], sizes = [8, 32], strides = [1, 1]} : vector<8x128xf32> to vector<8x32xf32>
    %322 = vector.extract_strided_slice %318 {offsets = [0, 96], sizes = [8, 32], strides = [1, 1]} : vector<8x128xf32> to vector<8x32xf32>
    %323 = arith.mulf %320, %302 : vector<8x32xf32>
    %324 = arith.mulf %319, %321 : vector<8x32xf32>
    %325 = arith.addf %323, %324 : vector<8x32xf32>
    %326 = math.tanh %325 : vector<8x32xf32>
    %327 = arith.mulf %322, %326 : vector<8x32xf32>
    %c4_i32_92 = arith.constant 4 : i32
    %c8_i32_93 = arith.constant 8 : i32
    %328 = arith.muli %c4_i32_92, %c8_i32_93 : i32
    %329 = tpu.assume_multiple %328, 8 : i32
    %330 = arith.index_cast %329 : i32 to index
    %c0_94 = arith.constant 0 : index
    %331 = vector.load %arg13[%330, %c0_94] : memref<64x128xf32, #tpu.memory_space<vmem>>, vector<8x128xf32>
    %332 = arith.truncf %327 : vector<8x32xf32> to vector<8x32xbf16>
    %cst_95 = arith.constant dense<0.000000e+00> : vector<8x128xf32>
    %333 = tpu.matmul %332, %226, %cst_95 {dimension_numbers = #tpu.dot_dimension_numbers<[1], [0], [0], [1], [0, 0, 1, 1], [], []>} : vector<8x32xbf16>, vector<32x128xbf16>, vector<8x128xf32> -> vector<8x128xf32>
    %334 = arith.addf %331, %333 : vector<8x128xf32>
    %335 = math.tanh %334 : vector<8x128xf32>
    %336 = arith.negf %334 : vector<8x128xf32>
    %337 = math.exp %336 : vector<8x128xf32>
    %cst_96 = arith.constant 1.000000e+00 : f32
    %338 = vector.broadcast %cst_96 : f32 to vector<8x128xf32>
    %339 = arith.addf %338, %337 : vector<8x128xf32>
    %340 = arith.divf %338, %339 : vector<8x128xf32>
    %341 = arith.select %5, %335, %340 : vector<8x128xi1>, vector<8x128xf32>
    %342 = vector.extract_strided_slice %341 {offsets = [0, 0], sizes = [8, 32], strides = [1, 1]} : vector<8x128xf32> to vector<8x32xf32>
    %343 = vector.extract_strided_slice %341 {offsets = [0, 32], sizes = [8, 32], strides = [1, 1]} : vector<8x128xf32> to vector<8x32xf32>
    %344 = vector.extract_strided_slice %341 {offsets = [0, 64], sizes = [8, 32], strides = [1, 1]} : vector<8x128xf32> to vector<8x32xf32>
    %345 = vector.extract_strided_slice %341 {offsets = [0, 96], sizes = [8, 32], strides = [1, 1]} : vector<8x128xf32> to vector<8x32xf32>
    %346 = arith.mulf %343, %325 : vector<8x32xf32>
    %347 = arith.mulf %342, %344 : vector<8x32xf32>
    %348 = arith.addf %346, %347 : vector<8x32xf32>
    %349 = math.tanh %348 : vector<8x32xf32>
    %350 = arith.mulf %345, %349 : vector<8x32xf32>
    %c5_i32_97 = arith.constant 5 : i32
    %c8_i32_98 = arith.constant 8 : i32
    %351 = arith.muli %c5_i32_97, %c8_i32_98 : i32
    %352 = tpu.assume_multiple %351, 8 : i32
    %353 = arith.index_cast %352 : i32 to index
    %c0_99 = arith.constant 0 : index
    %354 = vector.load %arg13[%353, %c0_99] : memref<64x128xf32, #tpu.memory_space<vmem>>, vector<8x128xf32>
    %355 = arith.truncf %350 : vector<8x32xf32> to vector<8x32xbf16>
    %cst_100 = arith.constant dense<0.000000e+00> : vector<8x128xf32>
    %356 = tpu.matmul %355, %226, %cst_100 {dimension_numbers = #tpu.dot_dimension_numbers<[1], [0], [0], [1], [0, 0, 1, 1], [], []>} : vector<8x32xbf16>, vector<32x128xbf16>, vector<8x128xf32> -> vector<8x128xf32>
    %357 = arith.addf %354, %356 : vector<8x128xf32>
    %358 = math.tanh %357 : vector<8x128xf32>
    %359 = arith.negf %357 : vector<8x128xf32>
    %360 = math.exp %359 : vector<8x128xf32>
    %cst_101 = arith.constant 1.000000e+00 : f32
    %361 = vector.broadcast %cst_101 : f32 to vector<8x128xf32>
    %362 = arith.addf %361, %360 : vector<8x128xf32>
    %363 = arith.divf %361, %362 : vector<8x128xf32>
    %364 = arith.select %5, %358, %363 : vector<8x128xi1>, vector<8x128xf32>
    %365 = vector.extract_strided_slice %364 {offsets = [0, 0], sizes = [8, 32], strides = [1, 1]} : vector<8x128xf32> to vector<8x32xf32>
    %366 = vector.extract_strided_slice %364 {offsets = [0, 32], sizes = [8, 32], strides = [1, 1]} : vector<8x128xf32> to vector<8x32xf32>
    %367 = vector.extract_strided_slice %364 {offsets = [0, 64], sizes = [8, 32], strides = [1, 1]} : vector<8x128xf32> to vector<8x32xf32>
    %368 = vector.extract_strided_slice %364 {offsets = [0, 96], sizes = [8, 32], strides = [1, 1]} : vector<8x128xf32> to vector<8x32xf32>
    %369 = arith.mulf %366, %348 : vector<8x32xf32>
    %370 = arith.mulf %365, %367 : vector<8x32xf32>
    %371 = arith.addf %369, %370 : vector<8x32xf32>
    %372 = math.tanh %371 : vector<8x32xf32>
    %373 = arith.mulf %368, %372 : vector<8x32xf32>
    %c6_i32_102 = arith.constant 6 : i32
    %c8_i32_103 = arith.constant 8 : i32
    %374 = arith.muli %c6_i32_102, %c8_i32_103 : i32
    %375 = tpu.assume_multiple %374, 8 : i32
    %376 = arith.index_cast %375 : i32 to index
    %c0_104 = arith.constant 0 : index
    %377 = vector.load %arg13[%376, %c0_104] : memref<64x128xf32, #tpu.memory_space<vmem>>, vector<8x128xf32>
    %378 = arith.truncf %373 : vector<8x32xf32> to vector<8x32xbf16>
    %cst_105 = arith.constant dense<0.000000e+00> : vector<8x128xf32>
    %379 = tpu.matmul %378, %226, %cst_105 {dimension_numbers = #tpu.dot_dimension_numbers<[1], [0], [0], [1], [0, 0, 1, 1], [], []>} : vector<8x32xbf16>, vector<32x128xbf16>, vector<8x128xf32> -> vector<8x128xf32>
    %380 = arith.addf %377, %379 : vector<8x128xf32>
    %381 = math.tanh %380 : vector<8x128xf32>
    %382 = arith.negf %380 : vector<8x128xf32>
    %383 = math.exp %382 : vector<8x128xf32>
    %cst_106 = arith.constant 1.000000e+00 : f32
    %384 = vector.broadcast %cst_106 : f32 to vector<8x128xf32>
    %385 = arith.addf %384, %383 : vector<8x128xf32>
    %386 = arith.divf %384, %385 : vector<8x128xf32>
    %387 = arith.select %5, %381, %386 : vector<8x128xi1>, vector<8x128xf32>
    %388 = vector.extract_strided_slice %387 {offsets = [0, 0], sizes = [8, 32], strides = [1, 1]} : vector<8x128xf32> to vector<8x32xf32>
    %389 = vector.extract_strided_slice %387 {offsets = [0, 32], sizes = [8, 32], strides = [1, 1]} : vector<8x128xf32> to vector<8x32xf32>
    %390 = vector.extract_strided_slice %387 {offsets = [0, 64], sizes = [8, 32], strides = [1, 1]} : vector<8x128xf32> to vector<8x32xf32>
    %391 = vector.extract_strided_slice %387 {offsets = [0, 96], sizes = [8, 32], strides = [1, 1]} : vector<8x128xf32> to vector<8x32xf32>
    %392 = arith.mulf %389, %371 : vector<8x32xf32>
    %393 = arith.mulf %388, %390 : vector<8x32xf32>
    %394 = arith.addf %392, %393 : vector<8x32xf32>
    %395 = math.tanh %394 : vector<8x32xf32>
    %396 = arith.mulf %391, %395 : vector<8x32xf32>
    %c7_i32_107 = arith.constant 7 : i32
    %c8_i32_108 = arith.constant 8 : i32
    %397 = arith.muli %c7_i32_107, %c8_i32_108 : i32
    %398 = tpu.assume_multiple %397, 8 : i32
    %399 = arith.index_cast %398 : i32 to index
    %c0_109 = arith.constant 0 : index
    %400 = vector.load %arg13[%399, %c0_109] : memref<64x128xf32, #tpu.memory_space<vmem>>, vector<8x128xf32>
    %401 = arith.truncf %396 : vector<8x32xf32> to vector<8x32xbf16>
    %cst_110 = arith.constant dense<0.000000e+00> : vector<8x128xf32>
    %402 = tpu.matmul %401, %226, %cst_110 {dimension_numbers = #tpu.dot_dimension_numbers<[1], [0], [0], [1], [0, 0, 1, 1], [], []>} : vector<8x32xbf16>, vector<32x128xbf16>, vector<8x128xf32> -> vector<8x128xf32>
    %403 = arith.addf %400, %402 : vector<8x128xf32>
    %404 = math.tanh %403 : vector<8x128xf32>
    %405 = arith.negf %403 : vector<8x128xf32>
    %406 = math.exp %405 : vector<8x128xf32>
    %cst_111 = arith.constant 1.000000e+00 : f32
    %407 = vector.broadcast %cst_111 : f32 to vector<8x128xf32>
    %408 = arith.addf %407, %406 : vector<8x128xf32>
    %409 = arith.divf %407, %408 : vector<8x128xf32>
    %410 = arith.select %5, %404, %409 : vector<8x128xi1>, vector<8x128xf32>
    %411 = vector.extract_strided_slice %410 {offsets = [0, 0], sizes = [8, 32], strides = [1, 1]} : vector<8x128xf32> to vector<8x32xf32>
    %412 = vector.extract_strided_slice %410 {offsets = [0, 32], sizes = [8, 32], strides = [1, 1]} : vector<8x128xf32> to vector<8x32xf32>
    %413 = vector.extract_strided_slice %410 {offsets = [0, 64], sizes = [8, 32], strides = [1, 1]} : vector<8x128xf32> to vector<8x32xf32>
    %414 = vector.extract_strided_slice %410 {offsets = [0, 96], sizes = [8, 32], strides = [1, 1]} : vector<8x128xf32> to vector<8x32xf32>
    %415 = arith.mulf %412, %394 : vector<8x32xf32>
    %416 = arith.mulf %411, %413 : vector<8x32xf32>
    %417 = arith.addf %415, %416 : vector<8x32xf32>
    %418 = math.tanh %417 : vector<8x32xf32>
    %419 = arith.mulf %414, %418 : vector<8x32xf32>
    %c8_i32_112 = arith.constant 8 : i32
    %420 = vector.extract_strided_slice %419 {offsets = [0, 0], sizes = [4, 32], strides = [1, 1]} : vector<8x32xf32> to vector<4x32xf32>
    %cst_113 = arith.constant dense<0.000000e+00> : vector<32xf32>
    %421 = vector.multi_reduction <add>, %420, %cst_113 [0] : vector<4x32xf32> to vector<32xf32>
    %422 = vector.shape_cast %421 : vector<32xf32> to vector<1x32xf32>
    %cst_114 = arith.constant 4.000000e+00 : f32
    %423 = vector.broadcast %cst_114 : f32 to vector<1x32xf32>
    %424 = arith.divf %422, %423 : vector<1x32xf32>
    %425 = vector.broadcast %424 : vector<1x32xf32> to vector<4x32xf32>
    %426 = arith.subf %420, %425 : vector<4x32xf32>
    %427 = arith.mulf %426, %426 : vector<4x32xf32>
    %cst_115 = arith.constant dense<0.000000e+00> : vector<32xf32>
    %428 = vector.multi_reduction <add>, %427, %cst_115 [0] : vector<4x32xf32> to vector<32xf32>
    %429 = vector.shape_cast %428 : vector<32xf32> to vector<1x32xf32>
    %cst_116 = arith.constant 4.000000e+00 : f32
    %430 = vector.broadcast %cst_116 : f32 to vector<1x32xf32>
    %431 = arith.divf %429, %430 : vector<1x32xf32>
    %432 = vector.broadcast %424 : vector<1x32xf32> to vector<4x32xf32>
    %433 = arith.subf %420, %432 : vector<4x32xf32>
    %cst_117 = arith.constant 9.99999974E-6 : f32
    %434 = vector.broadcast %cst_117 : f32 to vector<1x32xf32>
    %435 = arith.addf %431, %434 : vector<1x32xf32>
    %436 = math.rsqrt %435 : vector<1x32xf32>
    %437 = vector.broadcast %436 : vector<1x32xf32> to vector<4x32xf32>
    %438 = arith.mulf %433, %437 : vector<4x32xf32>
    %c0_118 = arith.constant 0 : index
    %c0_119 = arith.constant 0 : index
    %439 = vector.load %arg8[%c0_118, %c0_119] : memref<1x32xf32, #tpu.memory_space<vmem>>, vector<1x32xf32>
    %440 = vector.broadcast %439 : vector<1x32xf32> to vector<4x32xf32>
    %441 = arith.mulf %438, %440 : vector<4x32xf32>
    %c0_120 = arith.constant 0 : index
    %c0_121 = arith.constant 0 : index
    %442 = vector.load %arg9[%c0_120, %c0_121] : memref<1x32xf32, #tpu.memory_space<vmem>>, vector<1x32xf32>
    %443 = vector.broadcast %442 : vector<1x32xf32> to vector<4x32xf32>
    %444 = arith.addf %441, %443 : vector<4x32xf32>
    %445 = arith.truncf %444 : vector<4x32xf32> to vector<4x32xbf16>
    %c0_122 = arith.constant 0 : index
    %c0_123 = arith.constant 0 : index
    %446 = vector.load %arg10[%c0_122, %c0_123] : memref<32x8xbf16, #tpu.memory_space<vmem>>, vector<32x8xbf16>
    %cst_124 = arith.constant dense<0.000000e+00> : vector<4x8xf32>
    %447 = tpu.matmul %445, %446, %cst_124 {dimension_numbers = #tpu.dot_dimension_numbers<[1], [0], [0], [1], [0, 0, 1, 1], [], []>} : vector<4x32xbf16>, vector<32x8xbf16>, vector<4x8xf32> -> vector<4x8xf32>
    %c0_125 = arith.constant 0 : index
    %c0_126 = arith.constant 0 : index
    %448 = vector.load %arg11[%c0_125, %c0_126] : memref<1x8xf32, #tpu.memory_space<vmem>>, vector<1x8xf32>
    %449 = vector.broadcast %448 : vector<1x8xf32> to vector<4x8xf32>
    %450 = arith.addf %447, %449 : vector<4x8xf32>
    %c0_127 = arith.constant 0 : index
    %c0_128 = arith.constant 0 : index
    %451 = vector.load %arg12[%c0_127, %c0_128] : memref<4x8xf32, #tpu.memory_space<vmem>>, vector<4x8xf32>
    tpu.vector_store %arg12[%c0_127, %c0_128], %450 {strides = array<i32>} : memref<4x8xf32, #tpu.memory_space<vmem>>, vector<4x8xf32>,
    return
  }
  func.func @transform_0(%arg0: i32) -> (i32, i32) {
    %c0_i32 = arith.constant 0 : i32
    %c0_i32_0 = arith.constant 0 : i32
    %c0_i32_1 = arith.constant 0 : i32
    return %c0_i32, %c0_i32_0 : i32, i32
  }
  func.func @transform_1(%arg0: i32) -> (i32, i32) {
    %c0_i32 = arith.constant 0 : i32
    %c0_i32_0 = arith.constant 0 : i32
    %c0_i32_1 = arith.constant 0 : i32
    return %c0_i32, %c0_i32_0 : i32, i32
  }
  func.func @transform_2(%arg0: i32) -> (i32, i32) {
    %c0_i32 = arith.constant 0 : i32
    %c0_i32_0 = arith.constant 0 : i32
    %c0_i32_1 = arith.constant 0 : i32
    return %c0_i32, %c0_i32_0 : i32, i32
  }
  func.func @transform_3(%arg0: i32) -> (i32, i32) {
    %c0_i32 = arith.constant 0 : i32
    %c0_i32_0 = arith.constant 0 : i32
    %c0_i32_1 = arith.constant 0 : i32
    return %c0_i32, %c0_i32_0 : i32, i32
  }
  func.func @transform_4(%arg0: i32) -> (i32, i32) {
    %c0_i32 = arith.constant 0 : i32
    %c0_i32_0 = arith.constant 0 : i32
    %c0_i32_1 = arith.constant 0 : i32
    return %c0_i32, %c0_i32_0 : i32, i32
  }
  func.func @transform_5(%arg0: i32) -> (i32, i32) {
    %c0_i32 = arith.constant 0 : i32
    %c0_i32_0 = arith.constant 0 : i32
    %c0_i32_1 = arith.constant 0 : i32
    return %c0_i32, %c0_i32_0 : i32, i32
  }
  func.func @transform_6(%arg0: i32) -> (i32, i32) {
    %c0_i32 = arith.constant 0 : i32
    %c0_i32_0 = arith.constant 0 : i32
    %c0_i32_1 = arith.constant 0 : i32
    return %c0_i32, %c0_i32_0 : i32, i32
  }
  func.func @transform_7(%arg0: i32) -> (i32, i32) {
    %c0_i32 = arith.constant 0 : i32
    %c0_i32_0 = arith.constant 0 : i32
    %c0_i32_1 = arith.constant 0 : i32
    return %c0_i32, %c0_i32_0 : i32, i32
  }
  func.func @transform_8(%arg0: i32) -> (i32, i32) {
    %c0_i32 = arith.constant 0 : i32
    %c0_i32_0 = arith.constant 0 : i32
    %c0_i32_1 = arith.constant 0 : i32
    return %c0_i32, %c0_i32_0 : i32, i32
  }
  func.func @transform_9(%arg0: i32) -> (i32, i32) {
    %c0_i32 = arith.constant 0 : i32
    %c0_i32_0 = arith.constant 0 : i32
    %c0_i32_1 = arith.constant 0 : i32
    return %c0_i32, %c0_i32_0 : i32, i32
  }
  func.func @transform_10(%arg0: i32) -> (i32, i32) {
    %c0_i32 = arith.constant 0 : i32
    %c0_i32_0 = arith.constant 0 : i32
    %c0_i32_1 = arith.constant 0 : i32
    return %c0_i32, %c0_i32_0 : i32, i32
  }
  func.func @transform_11(%arg0: i32) -> (i32, i32) {
    %c0_i32 = arith.constant 0 : i32
    %c0_i32_0 = arith.constant 0 : i32
    %c0_i32_1 = arith.constant 0 : i32
    return %c0_i32, %c0_i32_0 : i32, i32
  }
}

</mosaic_0001>

<bundles_post_ra>
// kernel: lstm_model_forward.1
= control target key start
LH: loop header
LB: loop body
LE: loop exit
PB: predicated region body
PF: predicated region fallthrough
CT: control target
= control target key end

     0   :  { %s2007_s0 = inlined_call_operand.vmem [shape: f32[64,32], index: 0, kind: input, shape index: {}]   ;;  %s2008_s1 = inlined_call_operand.vmem [shape: bf16[32,128], index: 1, kind: input, shape index: {}]   ;;  %s2009_s2 = inlined_call_operand.vmem [shape: bf16[32,128], index: 2, kind: input, shape index: {}]   ;;  %s2010_s3 = inlined_call_operand.vmem [shape: f32[1,128], index: 3, kind: input, shape index: {}]   ;;  %s2011_s4 = inlined_call_operand.vmem [shape: bf16[32,128], index: 4, kind: input, shape index: {}]   ;;  %s2012_s5 = inlined_call_operand.vmem [shape: bf16[32,128], index: 5, kind: input, shape index: {}]   ;;  %s2013_s6 = inlined_call_operand.vmem [shape: f32[1,128], index: 6, kind: input, shape index: {}]   ;;  %s2014_s7 = inlined_call_operand.vmem [shape: f32[1,32], index: 7, kind: input, shape index: {}]   ;;  %s2015_s8 = inlined_call_operand.vmem [shape: f32[1,32], index: 8, kind: input, shape index: {}]   ;;  %s2016_s9 = inlined_call_operand.vmem [shape: bf16[32,8], index: 9, kind: input, shape index: {}]   ;;  %s2017_s10 = inlined_call_operand.vmem [shape: f32[1,8], index: 10, kind: input, shape index: {}]   ;;  %s2018_s11 = inlined_call_operand.hbm [shape: f32[4,8], index: 11, kind: output, shape index: {}]  }
   0x1   :  { %v1433_v0 = vld [vmem:[%s2008_s1 + $0x8] sm:$0xff]  ;;  %v1432_v2 = vld [vmem:[%s2008_s1] sm:$0xff] }
   0x2   :  { %v1684_v1 = vld [vmem:[%s2009_s2 + $0x8] sm:$0xff]  ;;  %v1692_v3 = vld [vmem:[%s2009_s2] sm:$0xff]  ;;  %100 = vmatpush.bf16.msra.mxu0 %v1433_v0 }
   0x3   :  { %v54_v4 = vld [vmem:[%s2007_s0] sm:$0xff]  ;;  %153 = vmatpush.bf16.msra.mxu1 %v1684_v1  ;;  %v55_v5 = vld [vmem:[%s2007_s0 + $0x8] sm:$0xff]  ;;  %219 = vmatpush.bf16.msra.mxu2 %v1684_v1 }
   0x4   :  { %286 = vmatpush.bf16.msra.mxu3 %v1684_v1 }
   0x5   :  { %16 = vsyncpa [#allocation5], 0  ;;  %v62_v6 = vpack.c.bf16 %v55_v5, %v54_v4  ;;  %vm81_vm0 = vcmask 261120   ;;  %v1612_v7 = vmov 0   ;;  %v1719_v8 = vld [vmem:[%s2010_s3] ss:$0 sm:$0xff]  ;;  %v40_v17 = vlaneseq }
   0x6   :  { %101 = vmatpush.bf16.msra.mxu0 %v1432_v2  ;;  %s1613_s29 = smov 64   ;;  %s1614_s30 = smov 32   ;;  %v56_v4 = vld [vmem:[%s2007_s0 + $0x10] sm:$0xff]  ;;  %v57_v5 = vld [vmem:[%s2007_s0 + $0x18] sm:$0xff] }
   0x7   :  { %154 = vmatpush.bf16.msra.mxu1 %v1692_v3  ;;  %220 = vmatpush.bf16.msra.mxu2 %v1692_v3  ;;  %v41_v19 = vand.u32 127, %v40_v17  ;;  %s1615_s16 = smov 96   ;;  %s1617_s19 = smov [#allocation4]  }
   0x8   :  { %287 = vmatpush.bf16.msra.mxu3 %v1692_v3  ;;  %s1342_s20 = sshll.u32 %s1617_s19, 4  ;;  %s1344_s23 = sshll.u32 %s2018_s11, 4  ;;  %s1343_s20 = int_to_ptr.vmem [resolvable:$true] %s1342_s20  ;;  %s1345_s23 = int_to_ptr.hbm [resolvable:$true] %s1344_s23 }
   0x9   :  { %1361 = vmatmul.msk.bf16.vlgmr.msra.gmra.mxu0 %vm81_vm0, %v62_v6  ;;  %vm42_vm1 = vcmp.ge.s32.totalorder %v41_v19, 64  ;;  %vm43_vm2 = vcmp.lt.s32.totalorder %v41_v19, 96  ;;  %v63_v6 = vpack.c.bf16 %v57_v5, %v56_v4 }
   0xa   :  { %155 = vmatmul.bf16.vlgmr.msra.gmra.mxu1 %v1612_v7  ;;  %vm1722_vm4 = vmand %vm42_vm1, %vm43_vm2 }
   0xb   :  { %353 = vmatpush.bf16.msrb.mxu1 %v1684_v1  ;;  %420 = vmatpush.bf16.msrb.mxu2 %v1684_v1 }
   0xc   :  { %487 = vmatpush.bf16.msrb.mxu3 %v1684_v1 }
   0xf   :  { %354 = vmatpush.bf16.msrb.mxu1 %v1692_v3  ;;  %421 = vmatpush.bf16.msrb.mxu2 %v1692_v3 }
  0x10   :  { %488 = vmatpush.bf16.msrb.mxu3 %v1692_v3 }
  0x13   :  { %554 = vmatpush.bf16.msra.mxu1 %v1684_v1 }
  0x17   :  { %555 = vmatpush.bf16.msra.mxu1 %v1692_v3 }
  0x19   :  { %1362 = vmatmul.msk.bf16.gmra.mxu0 %vm81_vm0, %v63_v6 }
  0x86   :  { %v103_v9 = vpop.f32.mrf.mxu0 }
  0x87   :  { %v156_v10 = vpop.f32.mrf.mxu1  ;;  %v104_v11 = vadd.f32 %v1719_v8, %v103_v9 }
  0x89   :  { %v160_v12 = vadd.f32 %v156_v10, %v104_v11 }
  0x8b   :  { %v1373_v13 = vmul.f32 -1.442695, %v160_v12 }
  0x8d   :  { %1453 = vpow2.f32 %v1373_v13 }
  0x8e   :  { %v105_v42 = vpop.f32.mrf.mxu0 }
  0x8f   :  { %v158_v14 = vpop.f32.mrf.mxu1  ;;  %v106_v43 = vadd.f32 %v1719_v8, %v105_v42 }
  0x93   :  { %v1454_v15 = vpop.eup %1453 }
  0x94   :  { %v165_v16 = vadd.f32 1.0, %v1454_v15 }
  0x96   :  { %1455 = vrcp.f32 %v165_v16  ;;  %v177_v22 = vand.u32 2147483648, %v165_v16  ;;  %v175_v24 = vand.u32 2147483647, %v165_v16  ;;  %vm171_vm5 = vweird.f32 %v165_v16  ;;  %v108_v13 = vpop.f32.mrf.mxu0 }
  0x97   :  { %1457 = vtanh.f32 %v160_v12  ;;  %v109_v14 = vadd.f32 %v1719_v8, %v108_v13 }
  0x98   :  { %v178_v27 = vor.u32 1.1754944e-38, %v177_v22  ;;  %vm176_vm7 = vcmp.eq.f32.partialorder %v175_v24, 8.507059e+37 }
  0x9c   :  { %v1456_v18 = vpop.eup %1455 }
  0x9d   :  { %v167_v20 = vmul.f32 %v1456_v18, %v165_v16  ;;  %vm172_vm3 = vweird.f32 %v1456_v18  ;;  %v1458_v29 = vpop.eup %1457 }
  0x9e   :  { %vm173_vm6 = vmor %vm171_vm5, %vm172_vm3 }
  0x9f   :  { %v168_v21 = vsub.f32 1.0, %v167_v20 }
  0xa1   :  { %v169_v23 = vmul.f32 %v1456_v18, %v168_v21 }
  0xa3   :  { %v170_v26 = vadd.f32 %v1456_v18, %v169_v23 }
  0xa5   :  { %v174_v28 = vsel %vm173_vm6, %v1456_v18, %v170_v26 }
  0xa6   :  { %v179_v30 = vsel %vm176_vm7, %v178_v27, %v174_v28 }
  0xa7   :  { %v181_v31 = vsel %vm1722_vm4, %v1458_v29, %v179_v30 }
  0xa8   :  { %184 = vrot.lane.b32.xlu0 %v181_v31, %s1613_s29  ;;  %v182_v34 = vmul.f32 0.0, %v181_v31 }
 0x11a   :  { %v185_v32 = vpop.permute.xlu0 %184 }
 0x11b   :  { %v187_v33 = vmul.f32 %v185_v32, %v181_v31 }
 0x11d   :  { %189 = vrot.lane.b32.xlu0 %v187_v33, %s1614_s30 }
 0x18f   :  { %v190_v35 = vpop.permute.xlu0 %189 }
 0x190   :  { %v192_v36 = vadd.f32 %v190_v35, %v182_v34 }
 0x192   :  { %1459 = vtanh.f32 %v192_v36 }
 0x198   :  { %v1460_v37 = vpop.eup %1459 }
 0x199   :  { %195 = vrot.lane.b32.xlu1 %v1460_v37, %s1613_s29 }
 0x20b   :  { %v196_v38 = vpop.permute.xlu1 %195 }
 0x20c   :  { %v1731_v39 = vmul.f32 %v196_v38, %v181_v31 }
 0x20e   :  { %v206_v40 = vpack.c.bf16 %v1731_v39, %v1731_v39 }
 0x210   :  { %208 = vrot.lane.b32.xlu1 %v206_v40, %s1614_s30 }
 0x282   :  { %v209_v41 = vpop.permute.xlu1 %208 }
 0x283   :  { %1374 = vmatmul.msk.bf16.vlgmr.msra.gmra.mxu2 %vm81_vm0, %v209_v41 }
 0x284   :  { %621 = vmatpush.bf16.msra.mxu2 %v1684_v1 }
 0x288   :  { %622 = vmatpush.bf16.msra.mxu2 %v1692_v3 }
 0x306   :  { %v222_v44 = vpop.f32.mrf.mxu2 }
 0x307   :  { %v226_v45 = vadd.f32 %v222_v44, %v106_v43 }
 0x309   :  { %v1375_v46 = vmul.f32 -1.442695, %v226_v45 }
 0x30b   :  { %1461 = vpow2.f32 %v1375_v46 }
 0x30e   :  { %v224_v47 = vpop.f32.mrf.mxu2 }
 0x311   :  { %v1462_v48 = vpop.eup %1461 }
 0x312   :  { %v231_v49 = vadd.f32 1.0, %v1462_v48 }
 0x314   :  { %1463 = vrcp.f32 %v231_v49  ;;  %v243_v53 = vand.u32 2147483648, %v231_v49  ;;  %v241_v55 = vand.u32 2147483647, %v231_v49  ;;  %vm237_vm9 = vweird.f32 %v231_v49 }
 0x315   :  { %1465 = vtanh.f32 %v226_v45  ;;  %v110_v45 = vpop.f32.mrf.mxu0 }
 0x316   :  { %v244_v57 = vor.u32 1.1754944e-38, %v243_v53  ;;  %vm242_vm11 = vcmp.eq.f32.partialorder %v241_v55, 8.507059e+37  ;;  %v111_v46 = vadd.f32 %v1719_v8, %v110_v45 }
 0x31a   :  { %v1464_v50 = vpop.eup %1463 }
 0x31b   :  { %v233_v51 = vmul.f32 %v1464_v50, %v231_v49  ;;  %vm238_vm8 = vweird.f32 %v1464_v50  ;;  %v1466_v59 = vpop.eup %1465 }
 0x31c   :  { %vm239_vm10 = vmor %vm237_vm9, %vm238_vm8 }
 0x31d   :  { %v234_v52 = vsub.f32 1.0, %v233_v51 }
 0x31f   :  { %v235_v54 = vmul.f32 %v1464_v50, %v234_v52 }
 0x321   :  { %v236_v56 = vadd.f32 %v1464_v50, %v235_v54 }
 0x323   :  { %v240_v58 = vsel %vm239_vm10, %v1464_v50, %v236_v56 }
 0x324   :  { %v245_v60 = vsel %vm242_vm11, %v244_v57, %v240_v58 }
 0x325   :  { %v247_v61 = vsel %vm1722_vm4, %v1466_v59, %v245_v60 }
 0x326   :  { %250 = vrot.lane.b32.xlu2 %v247_v61, %s1613_s29  ;;  %v248_v0 = vmul.f32 %v247_v61, %v192_v36 }
 0x380   :  { %v251_v62 = vpop.permute.xlu2 %250 }
 0x381   :  { %v253_v63 = vmul.f32 %v251_v62, %v247_v61 }
 0x383   :  { %255 = vrot.lane.b32.xlu2 %v253_v63, %s1614_s30 }
 0x3dd   :  { %v256_v1 = vpop.permute.xlu2 %255 }
 0x3de   :  { %v258_v2 = vadd.f32 %v256_v1, %v248_v0 }
 0x3e0   :  { %1467 = vtanh.f32 %v258_v2 }
 0x3e6   :  { %v1468_v3 = vpop.eup %1467 }
 0x3e7   :  { %261 = vrot.lane.b32.xlu0 %v1468_v3, %s1613_s29 }
 0x459   :  { %v262_v9 = vpop.permute.xlu0 %261 }
 0x45a   :  { %v1752_v10 = vmul.f32 %v262_v9, %v247_v61  ;;  %v58_v9 = vld [vmem:[%s2007_s0 + $0x20] sm:$0xff] }
 0x45c   :  { %v273_v11 = vpack.c.bf16 %v1752_v10, %v1752_v10 }
 0x45e   :  { %275 = vrot.lane.b32.xlu1 %v273_v11, %s1614_s30  ;;  %v59_v11 = vld [vmem:[%s2007_s0 + $0x28] sm:$0xff] }
 0x4d0   :  { %v276_v12 = vpop.permute.xlu1 %275 }
 0x4d1   :  { %1376 = vmatmul.msk.bf16.vlgmr.msra.gmra.mxu3 %vm81_vm0, %v276_v12  ;;  %v64_v12 = vpack.c.bf16 %v59_v11, %v58_v9 }
 0x4d3   :  { %1363 = vmatmul.msk.bf16.gmra.mxu0 %vm81_vm0, %v64_v12  ;;  %v1437_v12 = vld [vmem:[%s2011_s4 + $0x8] sm:$0xff] }
 0x4d4   :  { %727 = vmatpush.bf16.msra.mxu3 %v1437_v12 }
 0x554   :  { %v289_v15 = vpop.f32.mrf.mxu3 }
 0x555   :  { %v293_v16 = vadd.f32 %v289_v15, %v109_v14 }
 0x557   :  { %v1377_v17 = vmul.f32 -1.442695, %v293_v16 }
 0x559   :  { %1469 = vpow2.f32 %v1377_v17  ;;  %v113_v17 = vpop.f32.mrf.mxu0 }
 0x55c   :  { %v291_v18 = vpop.f32.mrf.mxu3 }
 0x55d   :  { %v114_v18 = vadd.f32 %v1719_v8, %v113_v17 }
 0x55f   :  { %v1470_v19 = vpop.eup %1469 }
 0x560   :  { %v298_v20 = vadd.f32 1.0, %v1470_v19 }
 0x562   :  { %1471 = vrcp.f32 %v298_v20  ;;  %v310_v24 = vand.u32 2147483648, %v298_v20  ;;  %v308_v27 = vand.u32 2147483647, %v298_v20  ;;  %vm304_vm13 = vweird.f32 %v298_v20 }
 0x563   :  { %1473 = vtanh.f32 %v293_v16 }
 0x564   :  { %v311_v29 = vor.u32 1.1754944e-38, %v310_v24  ;;  %vm309_vm15 = vcmp.eq.f32.partialorder %v308_v27, 8.507059e+37 }
 0x568   :  { %v1472_v21 = vpop.eup %1471 }
 0x569   :  { %v300_v22 = vmul.f32 %v1472_v21, %v298_v20  ;;  %vm305_vm12 = vweird.f32 %v1472_v21  ;;  %v1474_v31 = vpop.eup %1473 }
 0x56a   :  { %vm306_vm14 = vmor %vm304_vm13, %vm305_vm12 }
 0x56b   :  { %v301_v23 = vsub.f32 1.0, %v300_v22 }
 0x56d   :  { %v302_v26 = vmul.f32 %v1472_v21, %v301_v23 }
 0x56f   :  { %v303_v28 = vadd.f32 %v1472_v21, %v302_v26 }
 0x571   :  { %v307_v30 = vsel %vm306_vm14, %v1472_v21, %v303_v28 }
 0x572   :  { %v312_v32 = vsel %vm309_vm15, %v311_v29, %v307_v30 }
 0x573   :  { %v314_v33 = vsel %vm1722_vm4, %v1474_v31, %v312_v32 }
 0x574   :  { %317 = vrot.lane.b32.xlu2 %v314_v33, %s1613_s29  ;;  %v315_v36 = vmul.f32 %v314_v33, %v258_v2 }
 0x5ce   :  { %v318_v34 = vpop.permute.xlu2 %317 }
 0x5cf   :  { %v320_v35 = vmul.f32 %v318_v34, %v314_v33 }
 0x5d1   :  { %322 = vrot.lane.b32.xlu0 %v320_v35, %s1614_s30 }
 0x643   :  { %v323_v37 = vpop.permute.xlu0 %322 }
 0x644   :  { %v325_v38 = vadd.f32 %v323_v37, %v315_v36 }
 0x646   :  { %1475 = vtanh.f32 %v325_v38 }
 0x64c   :  { %v1476_v40 = vpop.eup %1475 }
 0x64d   :  { %328 = vrot.lane.b32.xlu1 %v1476_v40, %s1613_s29 }
 0x6bf   :  { %v329_v41 = vpop.permute.xlu1 %328 }
 0x6c0   :  { %v1764_v42 = vmul.f32 %v329_v41, %v314_v33 }
 0x6c2   :  { %v340_v43 = vpack.c.bf16 %v1764_v42, %v1764_v42 }
 0x6c4   :  { %342 = vrot.lane.b32.xlu2 %v340_v43, %s1614_s30 }
 0x71e   :  { %v343_v44 = vpop.permute.xlu2 %342 }
 0x71f   :  { %1378 = vmatmul.msk.bf16.vlgmr.msrb.gmra.mxu1 %vm81_vm0, %v343_v44 }
 0x79c   :  { %v356_v47 = vpop.f32.mrf.mxu1 }
 0x79d   :  { %v360_v48 = vadd.f32 %v356_v47, %v111_v46 }
 0x79f   :  { %v1379_v49 = vmul.f32 -1.442695, %v360_v48 }
 0x7a1   :  { %1477 = vpow2.f32 %v1379_v49 }
 0x7a4   :  { %v358_v50 = vpop.f32.mrf.mxu1 }
 0x7a5   :  { %v115_v50 = vpop.f32.mrf.mxu0 }
 0x7a7   :  { %v1478_v51 = vpop.eup %1477 }
 0x7a8   :  { %v365_v52 = vadd.f32 1.0, %v1478_v51  ;;  %v116_v51 = vadd.f32 %v1719_v8, %v115_v50 }
 0x7aa   :  { %1479 = vrcp.f32 %v365_v52  ;;  %v377_v56 = vand.u32 2147483648, %v365_v52  ;;  %v375_v58 = vand.u32 2147483647, %v365_v52  ;;  %vm371_vm2 = vweird.f32 %v365_v52 }
 0x7ab   :  { %1481 = vtanh.f32 %v360_v48 }
 0x7ac   :  { %v378_v60 = vor.u32 1.1754944e-38, %v377_v56  ;;  %vm376_vm5 = vcmp.eq.f32.partialorder %v375_v58, 8.507059e+37 }
 0x7b0   :  { %v1480_v53 = vpop.eup %1479 }
 0x7b1   :  { %v367_v54 = vmul.f32 %v1480_v53, %v365_v52  ;;  %vm372_vm1 = vweird.f32 %v1480_v53  ;;  %v1482_v62 = vpop.eup %1481 }
 0x7b2   :  { %vm373_vm3 = vmor %vm371_vm2, %vm372_vm1 }
 0x7b3   :  { %v368_v55 = vsub.f32 1.0, %v367_v54 }
 0x7b5   :  { %v369_v57 = vmul.f32 %v1480_v53, %v368_v55 }
 0x7b7   :  { %v370_v59 = vadd.f32 %v1480_v53, %v369_v57 }
 0x7b9   :  { %v374_v61 = vsel %vm373_vm3, %v1480_v53, %v370_v59 }
 0x7ba   :  { %v379_v63 = vsel %vm376_vm5, %v378_v60, %v374_v61 }
 0x7bb   :  { %v381_v0 = vsel %vm1722_vm4, %v1482_v62, %v379_v63 }
 0x7bc   :  { %384 = vrot.lane.b32.xlu0 %v381_v0, %s1613_s29  ;;  %v382_v3 = vmul.f32 %v381_v0, %v325_v38 }
 0x82e   :  { %v385_v1 = vpop.permute.xlu0 %384 }
 0x82f   :  { %v387_v2 = vmul.f32 %v385_v1, %v381_v0 }
 0x831   :  { %389 = vrot.lane.b32.xlu1 %v387_v2, %s1614_s30 }
 0x8a3   :  { %v390_v4 = vpop.permute.xlu1 %389 }
 0x8a4   :  { %v392_v5 = vadd.f32 %v390_v4, %v382_v3 }
 0x8a6   :  { %1483 = vtanh.f32 %v392_v5 }
 0x8ac   :  { %v1484_v6 = vpop.eup %1483 }
 0x8ad   :  { %395 = vrot.lane.b32.xlu2 %v1484_v6, %s1613_s29 }
 0x907   :  { %v396_v13 = vpop.permute.xlu2 %395 }
 0x908   :  { %v1783_v14 = vmul.f32 %v396_v13, %v381_v0  ;;  %v1436_v13 = vld [vmem:[%s2011_s4] sm:$0xff] }
 0x909   :  { %728 = vmatpush.bf16.msra.mxu3 %v1436_v13 }
 0x90a   :  { %v407_v15 = vpack.c.bf16 %v1783_v14, %v1783_v14 }
 0x90c   :  { %409 = vrot.lane.b32.xlu0 %v407_v15, %s1614_s30 }
 0x97e   :  { %v410_v16 = vpop.permute.xlu0 %409 }
 0x97f   :  { %1380 = vmatmul.msk.bf16.vlgmr.msrb.gmra.mxu2 %vm81_vm0, %v410_v16 }
 0xa02   :  { %v423_v19 = vpop.f32.mrf.mxu2 }
 0xa03   :  { %v427_v20 = vadd.f32 %v423_v19, %v114_v18 }
 0xa05   :  { %v1381_v21 = vmul.f32 -1.442695, %v427_v20 }
 0xa07   :  { %1485 = vpow2.f32 %v1381_v21 }
 0xa0a   :  { %v425_v22 = vpop.f32.mrf.mxu2 }
 0xa0d   :  { %v1486_v23 = vpop.eup %1485 }
 0xa0e   :  { %v432_v24 = vadd.f32 1.0, %v1486_v23 }
 0xa10   :  { %1487 = vrcp.f32 %v432_v24  ;;  %v444_v29 = vand.u32 2147483648, %v432_v24  ;;  %v442_v31 = vand.u32 2147483647, %v432_v24  ;;  %vm438_vm7 = vweird.f32 %v432_v24 }
 0xa11   :  { %1489 = vtanh.f32 %v427_v20 }
 0xa12   :  { %v445_v33 = vor.u32 1.1754944e-38, %v444_v29  ;;  %vm443_vm9 = vcmp.eq.f32.partialorder %v442_v31, 8.507059e+37  ;;  %v1844_v29 = vld [vmem:[%s2012_s5] sm:$0xff] }
 0xa16   :  { %v1488_v26 = vpop.eup %1487 }
 0xa17   :  { %v434_v27 = vmul.f32 %v1488_v26, %v432_v24  ;;  %vm439_vm6 = vweird.f32 %v1488_v26  ;;  %v1490_v35 = vpop.eup %1489  ;;  %v60_v24 = vld [vmem:[%s2007_s0 + $0x30] sm:$0xff] }
 0xa18   :  { %vm440_vm8 = vmor %vm438_vm7, %vm439_vm6 }
 0xa19   :  { %v435_v28 = vsub.f32 1.0, %v434_v27 }
 0xa1b   :  { %v436_v30 = vmul.f32 %v1488_v26, %v435_v28  ;;  %v1838_v28 = vld [vmem:[%s2012_s5 + $0x8] sm:$0xff] }
 0xa1c   :  { %777 = vmatpush.bf16.msrb.mxu1 %v1838_v28  ;;  %837 = vmatpush.bf16.msrb.mxu2 %v1838_v28 }
 0xa1d   :  { %v437_v32 = vadd.f32 %v1488_v26, %v436_v30  ;;  %897 = vmatpush.bf16.msrb.mxu0 %v1838_v28 }
 0xa1f   :  { %v441_v34 = vsel %vm440_vm8, %v1488_v26, %v437_v32  ;;  %v61_v26 = vld [vmem:[%s2007_s0 + $0x38] sm:$0xff] }
 0xa20   :  { %v446_v36 = vsel %vm443_vm9, %v445_v33, %v441_v34  ;;  %v65_v27 = vpack.c.bf16 %v61_v26, %v60_v24  ;;  %778 = vmatpush.bf16.msrb.mxu1 %v1844_v29  ;;  %838 = vmatpush.bf16.msrb.mxu2 %v1844_v29 }
 0xa21   :  { %v448_v37 = vsel %vm1722_vm4, %v1490_v35, %v446_v36  ;;  %898 = vmatpush.bf16.msrb.mxu0 %v1844_v29 }
 0xa22   :  { %451 = vrot.lane.b32.xlu1 %v448_v37, %s1613_s29  ;;  %v449_v41 = vmul.f32 %v448_v37, %v392_v5  ;;  %1364 = vmatmul.msk.bf16.gmra.mxu0 %vm81_vm0, %v65_v27 }
 0xa25   :  { %1077 = vmatpush.bf16.msra.mxu0 %v1838_v28 }
 0xa29   :  { %1078 = vmatpush.bf16.msra.mxu0 %v1844_v29 }
 0xa94   :  { %v452_v38 = vpop.permute.xlu1 %451 }
 0xa95   :  { %v454_v40 = vmul.f32 %v452_v38, %v448_v37  ;;  %v1863_v38 = vld [vmem:[%s2013_s6] ss:$0 sm:$0xff] }
 0xa97   :  { %456 = vrot.lane.b32.xlu2 %v454_v40, %s1614_s30 }
 0xa9f   :  { %v118_v31 = vpop.f32.mrf.mxu0 }
 0xaa0   :  { %v119_v32 = vadd.f32 %v1719_v8, %v118_v31 }
 0xaf1   :  { %v457_v43 = vpop.permute.xlu2 %456 }
 0xaf2   :  { %v459_v44 = vadd.f32 %v457_v43, %v449_v41 }
 0xaf4   :  { %1491 = vtanh.f32 %v459_v44 }
 0xafa   :  { %v1492_v45 = vpop.eup %1491 }
 0xafb   :  { %462 = vrot.lane.b32.xlu0 %v1492_v45, %s1613_s29 }
 0xb6d   :  { %v463_v46 = vpop.permute.xlu0 %462 }
 0xb6e   :  { %v1795_v47 = vmul.f32 %v463_v46, %v448_v37 }
 0xb70   :  { %v474_v48 = vpack.c.bf16 %v1795_v47, %v1795_v47 }
 0xb72   :  { %476 = vrot.lane.b32.xlu1 %v474_v48, %s1614_s30 }
 0xbe4   :  { %v477_v49 = vpop.permute.xlu1 %476 }
 0xbe5   :  { %1382 = vmatmul.msk.bf16.vlgmr.msrb.gmra.mxu3 %vm81_vm0, %v477_v49 }
 0xc68   :  { %v490_v52 = vpop.f32.mrf.mxu3 }
 0xc69   :  { %v494_v53 = vadd.f32 %v490_v52, %v116_v51 }
 0xc6b   :  { %v1383_v54 = vmul.f32 -1.442695, %v494_v53 }
 0xc6d   :  { %1493 = vpow2.f32 %v1383_v54 }
 0xc70   :  { %v492_v55 = vpop.f32.mrf.mxu3 }
 0xc73   :  { %v1494_v56 = vpop.eup %1493 }
 0xc74   :  { %v499_v57 = vadd.f32 1.0, %v1494_v56 }
 0xc76   :  { %1495 = vrcp.f32 %v499_v57  ;;  %v511_v61 = vand.u32 2147483648, %v499_v57  ;;  %v509_v63 = vand.u32 2147483647, %v499_v57  ;;  %vm505_vm11 = vweird.f32 %v499_v57 }
 0xc77   :  { %1497 = vtanh.f32 %v494_v53 }
 0xc78   :  { %v512_v1 = vor.u32 1.1754944e-38, %v511_v61  ;;  %vm510_vm13 = vcmp.eq.f32.partialorder %v509_v63, 8.507059e+37 }
 0xc7c   :  { %v1496_v58 = vpop.eup %1495 }
 0xc7d   :  { %v501_v59 = vmul.f32 %v1496_v58, %v499_v57  ;;  %vm506_vm10 = vweird.f32 %v1496_v58  ;;  %v1498_v3 = vpop.eup %1497 }
 0xc7e   :  { %vm507_vm12 = vmor %vm505_vm11, %vm506_vm10 }
 0xc7f   :  { %v502_v60 = vsub.f32 1.0, %v501_v59 }
 0xc81   :  { %v503_v62 = vmul.f32 %v1496_v58, %v502_v60 }
 0xc83   :  { %v504_v0 = vadd.f32 %v1496_v58, %v503_v62 }
 0xc85   :  { %v508_v2 = vsel %vm507_vm12, %v1496_v58, %v504_v0 }
 0xc86   :  { %v513_v4 = vsel %vm510_vm13, %v512_v1, %v508_v2 }
 0xc87   :  { %v515_v5 = vsel %vm1722_vm4, %v1498_v3, %v513_v4 }
 0xc88   :  { %518 = vrot.lane.b32.xlu2 %v515_v5, %s1613_s29 }
 0xc90   :  { %200 = vrot.lane.b32.xlu2 %v1731_v39, %s1614_s30  ;;  %v516_v39 = vmul.f32 %v515_v5, %v459_v44 }
 0xce2   :  { %v519_v6 = vpop.permute.xlu2 %518 }
 0xce3   :  { %v521_v9 = vmul.f32 %v519_v6, %v515_v5 }
 0xce5   :  { %523 = vrot.lane.b32.xlu0 %v521_v9, %s1614_s30 }
 0xcea   :  { %v201_v11 = vpop.permute.xlu2 %200 }
 0xceb   :  { %203 = vst.msk [vmem:[#allocation3] sm:$0xff] %vm81_vm0, %v201_v11 }
 0xced   :  { %266 = vrot.lane.b32.xlu0 %v1752_v10, %s1614_s30 }
 0xcf2   :  { %v682_v10 = vld [vmem:[#allocation3] sm:$0xff] }
 0xd57   :  { %v524_v15 = vpop.permute.xlu0 %523 }
 0xd58   :  { %v1817_v16 = vadd.f32 %v524_v15, %v516_v39 }
 0xd5a   :  { %1499 = vtanh.f32 %v1817_v16 }
 0xd5f   :  { %v267_v17 = vpop.permute.xlu0 %266 }
 0xd60   :  { %v1500_v18 = vpop.eup %1499  ;;  %270 = vst.msk [vmem:[#allocation3 + $0x8] sm:$0xff] %vm81_vm0, %v267_v17 }
 0xd61   :  { %529 = vrot.lane.b32.xlu1 %v1500_v18, %s1613_s29 }
 0xd67   :  { %v683_v19 = vld [vmem:[#allocation3 + $0x8] sm:$0xff] }
 0xd68   :  { %v690_v20 = vpack.c.bf16 %v683_v19, %v682_v10 }
 0xd6a   :  { %1396 = vmatmul.msk.bf16.vlgmr.msra.gmra.mxu3 %vm81_vm0, %v690_v20 }
 0xdd3   :  { %v530_v21 = vpop.permute.xlu1 %529 }
 0xdd4   :  { %v1823_v22 = vmul.f32 %v530_v21, %v515_v5 }
 0xdd6   :  { %v541_v23 = vpack.c.bf16 %v1823_v22, %v1823_v22 }
 0xdd8   :  { %543 = vrot.lane.b32.xlu1 %v541_v23, %s1614_s30 }
 0xded   :  { %v730_v40 = vpop.f32.mrf.mxu3 }
 0xdee   :  { %v731_v41 = vadd.f32 %v1863_v38, %v730_v40 }
 0xe4a   :  { %v544_v30 = vpop.permute.xlu1 %543 }
 0xe4b   :  { %1384 = vmatmul.msk.bf16.vlgmr.msra.gmra.mxu1 %vm81_vm0, %v544_v30 }
 0xe4c   :  { %957 = vmatpush.bf16.msra.mxu1 %v1838_v28 }
 0xe50   :  { %958 = vmatpush.bf16.msra.mxu1 %v1844_v29 }
 0xe5b   :  { %779 = vmatmul.bf16.vlgmr.msrb.gmra.mxu1 %v1612_v7 }
 0xe5c   :  { %1137 = vmatpush.bf16.msrb.mxu1 %v1838_v28 }
 0xe60   :  { %1138 = vmatpush.bf16.msrb.mxu1 %v1844_v29 }
 0xec8   :  { %v557_v33 = vpop.f32.mrf.mxu1 }
 0xec9   :  { %v561_v34 = vadd.f32 %v557_v33, %v119_v32 }
 0xecb   :  { %v1385_v35 = vmul.f32 -1.442695, %v561_v34 }
 0xecd   :  { %1501 = vpow2.f32 %v1385_v35 }
 0xed0   :  { %v559_v36 = vpop.f32.mrf.mxu1 }
 0xed3   :  { %v1502_v37 = vpop.eup %1501 }
 0xed4   :  { %v566_v7 = vadd.f32 1.0, %v1502_v37  ;;  %v732_v37 = vpop.f32.mrf.mxu3 }
 0xed5   :  { %v733_v40 = vadd.f32 %v1863_v38, %v732_v37 }
 0xed6   :  { %1503 = vrcp.f32 %v566_v7  ;;  %v578_v50 = vand.u32 2147483648, %v566_v7  ;;  %v576_v52 = vand.u32 2147483647, %v566_v7  ;;  %vm572_vm15 = vweird.f32 %v566_v7 }
 0xed8   :  { %v780_v43 = vpop.f32.mrf.mxu1  ;;  %v579_v56 = vor.u32 1.1754944e-38, %v578_v50  ;;  %vm577_vm2 = vcmp.eq.f32.partialorder %v576_v52, 8.507059e+37 }
 0xed9   :  { %v784_v44 = vadd.f32 %v780_v43, %v731_v41 }
 0xedb   :  { %v1408_v45 = vmul.f32 -1.442695, %v784_v44 }
 0xedc   :  { %v1504_v8 = vpop.eup %1503 }
 0xedd   :  { %1505 = vpow2.f32 %v1408_v45  ;;  %v568_v46 = vmul.f32 %v1504_v8, %v566_v7  ;;  %vm573_vm14 = vweird.f32 %v1504_v8 }
 0xede   :  { %1507 = vtanh.f32 %v561_v34  ;;  %vm574_vm1 = vmor %vm572_vm15, %vm573_vm14 }
 0xedf   :  { %v569_v48 = vsub.f32 1.0, %v568_v46 }
 0xee0   :  { %v782_v49 = vpop.f32.mrf.mxu1 }
 0xee1   :  { %v570_v51 = vmul.f32 %v1504_v8, %v569_v48 }
 0xee3   :  { %v1506_v53 = vpop.eup %1505  ;;  %v571_v54 = vadd.f32 %v1504_v8, %v570_v51 }
 0xee4   :  { %v789_v55 = vadd.f32 1.0, %v1506_v53  ;;  %v1508_v58 = vpop.eup %1507 }
 0xee5   :  { %v575_v57 = vsel %vm574_vm1, %v1504_v8, %v571_v54 }
 0xee6   :  { %1509 = vrcp.f32 %v789_v55  ;;  %v580_v59 = vsel %vm577_vm2, %v579_v56, %v575_v57  ;;  %v801_v0 = vand.u32 2147483648, %v789_v55  ;;  %v799_v2 = vand.u32 2147483647, %v789_v55 }
 0xee7   :  { %v582_v60 = vsel %vm1722_vm4, %v1508_v58, %v580_v59  ;;  %1511 = vtanh.f32 %v784_v44  ;;  %vm795_vm5 = vweird.f32 %v789_v55 }
 0xee8   :  { %585 = vrot.lane.b32.xlu2 %v582_v60, %s1613_s29  ;;  %v802_v4 = vor.u32 1.1754944e-38, %v801_v0  ;;  %vm800_vm7 = vcmp.eq.f32.partialorder %v799_v2, 8.507059e+37  ;;  %v583_v17 = vmul.f32 %v582_v60, %v1817_v16 }
 0xeec   :  { %v1510_v61 = vpop.eup %1509 }
 0xeed   :  { %v791_v62 = vmul.f32 %v1510_v61, %v789_v55  ;;  %vm796_vm3 = vweird.f32 %v1510_v61  ;;  %v1512_v6 = vpop.eup %1511 }
 0xeee   :  { %vm797_vm6 = vmor %vm795_vm5, %vm796_vm3 }
 0xeef   :  { %v792_v63 = vsub.f32 1.0, %v791_v62 }
 0xef1   :  { %v793_v1 = vmul.f32 %v1510_v61, %v792_v63 }
 0xef3   :  { %v794_v3 = vadd.f32 %v1510_v61, %v793_v1 }
 0xef5   :  { %v798_v5 = vsel %vm797_vm6, %v1510_v61, %v794_v3 }
 0xef6   :  { %v803_v9 = vsel %vm800_vm7, %v802_v4, %v798_v5 }
 0xef7   :  { %v805_v11 = vsel %vm1722_vm4, %v1512_v6, %v803_v9  ;;  %v1909_v6 = vpop.f32.mrf.mxu0 }
 0xef8   :  { %808 = vrot.lane.b32.xlu0 %v805_v11, %s1613_s29  ;;  %v806_v20 = vmul.f32 0.0, %v805_v11 }
 0xf42   :  { %v586_v12 = vpop.permute.xlu2 %585 }
 0xf43   :  { %v588_v13 = vmul.f32 %v586_v12, %v582_v60 }
 0xf45   :  { %590 = vrot.lane.b32.xlu1 %v588_v13, %s1614_s30 }
 0xf6a   :  { %v809_v39 = vpop.permute.xlu0 %808 }
 0xf6b   :  { %v811_v15 = vmul.f32 %v809_v39, %v805_v11 }
 0xf6d   :  { %813 = vrot.lane.b32.xlu2 %v811_v15, %s1614_s30 }
 0xfb7   :  { %v591_v18 = vpop.permute.xlu1 %590 }
 0xfb8   :  { %v1875_v10 = vadd.f32 %v591_v18, %v583_v17 }
 0xfba   :  { %1513 = vtanh.f32 %v1875_v10 }
 0xfc0   :  { %v1514_v19 = vpop.eup %1513 }
 0xfc1   :  { %596 = vrot.lane.b32.xlu0 %v1514_v19, %s1613_s29 }
 0xfc7   :  { %v814_v21 = vpop.permute.xlu2 %813 }
 0xfc8   :  { %v816_v23 = vadd.f32 %v814_v21, %v806_v20 }
 0xfca   :  { %1515 = vtanh.f32 %v816_v23 }
 0xfd0   :  { %v1516_v24 = vpop.eup %1515 }
 0xfd1   :  { %819 = vrot.lane.b32.xlu1 %v1516_v24, %s1613_s29 }
0x1033   :  { %v597_v26 = vpop.permute.xlu0 %596 }
0x1034   :  { %v1880_v27 = vmul.f32 %v597_v26, %v582_v60 }
0x1036   :  { %v608_v16 = vpack.c.bf16 %v1880_v27, %v1880_v27 }
0x1038   :  { %610 = vrot.lane.b32.xlu2 %v608_v16, %s1614_s30 }
0x1043   :  { %v820_v30 = vpop.permute.xlu1 %819 }
0x1044   :  { %v822_v31 = vmul.f32 %v820_v30, %v805_v11 }
0x1046   :  { %v824_v32 = vpack.c.bf16 %v822_v31, %v822_v31 }
0x1048   :  { %826 = vrot.lane.b32.xlu0 %v824_v32, %s1614_s30 }
0x1092   :  { %v611_v33 = vpop.permute.xlu2 %610 }
0x1093   :  { %1386 = vmatmul.msk.bf16.vlgmr.msra.gmra.mxu2 %vm81_vm0, %v611_v33 }
0x1094   :  { %1017 = vmatpush.bf16.msra.mxu2 %v1838_v28 }
0x1098   :  { %1018 = vmatpush.bf16.msra.mxu2 %v1844_v29 }
0x10ba   :  { %v827_v34 = vpop.permute.xlu0 %826 }
0x10bb   :  { %1409 = vmatmul.msk.bf16.vlgmr.msrb.gmra.mxu2 %vm81_vm0, %v827_v34 }
0x10bc   :  { %1197 = vmatpush.bf16.msrb.mxu2 %v1838_v28 }
0x10c0   :  { %1198 = vmatpush.bf16.msrb.mxu2 %v1844_v29 }
0x1116   :  { %v1892_v35 = vpop.f32.mrf.mxu2 }
0x111e   :  { %v626_v36 = vpop.f32.mrf.mxu2 }
0x113e   :  { %v840_v7 = vpop.f32.mrf.mxu2 }
0x113f   :  { %v844_v41 = vadd.f32 %v840_v7, %v733_v40 }
0x1141   :  { %v1410_v43 = vmul.f32 -1.442695, %v844_v41 }
0x1143   :  { %1517 = vpow2.f32 %v1410_v43 }
0x1146   :  { %v842_v44 = vpop.f32.mrf.mxu2 }
0x1149   :  { %v1518_v45 = vpop.eup %1517 }
0x114a   :  { %v849_v8 = vadd.f32 1.0, %v1518_v45 }
0x114c   :  { %1519 = vrcp.f32 %v849_v8  ;;  %v861_v28 = vand.u32 2147483648, %v849_v8  ;;  %v859_v50 = vand.u32 2147483647, %v849_v8  ;;  %vm855_vm9 = vweird.f32 %v849_v8 }
0x114d   :  { %1521 = vtanh.f32 %v844_v41 }
0x114e   :  { %v862_v52 = vor.u32 1.1754944e-38, %v861_v28  ;;  %vm860_vm11 = vcmp.eq.f32.partialorder %v859_v50, 8.507059e+37 }
0x1152   :  { %v1520_v46 = vpop.eup %1519 }
0x1153   :  { %v851_v48 = vmul.f32 %v1520_v46, %v849_v8  ;;  %vm856_vm8 = vweird.f32 %v1520_v46  ;;  %v1522_v54 = vpop.eup %1521 }
0x1154   :  { %vm857_vm10 = vmor %vm855_vm9, %vm856_vm8 }
0x1155   :  { %v852_v49 = vsub.f32 1.0, %v851_v48 }
0x1157   :  { %v853_v29 = vmul.f32 %v1520_v46, %v852_v49 }
0x1159   :  { %v854_v51 = vadd.f32 %v1520_v46, %v853_v29 }
0x115b   :  { %v858_v53 = vsel %vm857_vm10, %v1520_v46, %v854_v51 }
0x115c   :  { %v863_v55 = vsel %vm860_vm11, %v862_v52, %v858_v53 }
0x115d   :  { %v865_v56 = vsel %vm1722_vm4, %v1522_v54, %v863_v55 }
0x115e   :  { %868 = vrot.lane.b32.xlu1 %v865_v56, %s1613_s29  ;;  %v866_v60 = vmul.f32 %v865_v56, %v816_v23 }
0x1166   :  { %333 = vrot.lane.b32.xlu1 %v1764_v42, %s1614_s30 }
0x11d0   :  { %v869_v57 = vpop.permute.xlu1 %868 }
0x11d1   :  { %v871_v58 = vmul.f32 %v869_v57, %v865_v56 }
0x11d3   :  { %873 = vrot.lane.b32.xlu2 %v871_v58, %s1614_s30 }
0x11d8   :  { %v334_v59 = vpop.permute.xlu1 %333 }
0x11d9   :  { %337 = vst.msk [vmem:[#allocation3 + $0x10] sm:$0xff] %vm81_vm0, %v334_v59 }
0x11db   :  { %400 = vrot.lane.b32.xlu2 %v1783_v14, %s1614_s30 }
0x11e0   :  { %v684_v42 = vld [vmem:[#allocation3 + $0x10] sm:$0xff] }
0x122d   :  { %v874_v61 = vpop.permute.xlu2 %873 }
0x122e   :  { %v876_v62 = vadd.f32 %v874_v61, %v866_v60 }
0x1230   :  { %1523 = vtanh.f32 %v876_v62 }
0x1235   :  { %v401_v63 = vpop.permute.xlu2 %400 }
0x1236   :  { %v1524_v0 = vpop.eup %1523  ;;  %404 = vst.msk [vmem:[#allocation3 + $0x18] sm:$0xff] %vm81_vm0, %v401_v63 }
0x1237   :  { %879 = vrot.lane.b32.xlu0 %v1524_v0, %s1613_s29 }
0x123d   :  { %v685_v1 = vld [vmem:[#allocation3 + $0x18] sm:$0xff] }
0x123e   :  { %v691_v2 = vpack.c.bf16 %v685_v1, %v684_v42 }
0x1240   :  { %1397 = vmatmul.msk.bf16.gmra.mxu3 %vm81_vm0, %v691_v2 }
0x12a9   :  { %v880_v3 = vpop.permute.xlu0 %879 }
0x12aa   :  { %v882_v4 = vmul.f32 %v880_v3, %v865_v56 }
0x12ac   :  { %v884_v5 = vpack.c.bf16 %v882_v4, %v882_v4 }
0x12ae   :  { %886 = vrot.lane.b32.xlu0 %v884_v5, %s1614_s30 }
0x12c3   :  { %v735_v9 = vpop.f32.mrf.mxu3 }
0x12c4   :  { %v736_v11 = vadd.f32 %v1863_v38, %v735_v9 }
0x12cb   :  { %v737_v48 = vpop.f32.mrf.mxu3 }
0x12cc   :  { %v738_v49 = vadd.f32 %v1863_v38, %v737_v48 }
0x1320   :  { %v887_v14 = vpop.permute.xlu0 %886 }
0x1321   :  { %1411 = vmatmul.msk.bf16.vlgmr.msrb.gmra.mxu0 %vm81_vm0, %v887_v14 }
0x139e   :  { %v900_v12 = vpop.f32.mrf.mxu0 }
0x139f   :  { %v904_v13 = vadd.f32 %v900_v12, %v736_v11 }
0x13a1   :  { %v1412_v39 = vmul.f32 -1.442695, %v904_v13 }
0x13a3   :  { %1525 = vpow2.f32 %v1412_v39 }
0x13a6   :  { %v902_v15 = vpop.f32.mrf.mxu0 }
0x13a9   :  { %v1526_v17 = vpop.eup %1525 }
0x13aa   :  { %v909_v18 = vadd.f32 1.0, %v1526_v17 }
0x13ac   :  { %1527 = vrcp.f32 %v909_v18  ;;  %v921_v23 = vand.u32 2147483648, %v909_v18  ;;  %v919_v26 = vand.u32 2147483647, %v909_v18  ;;  %vm915_vm13 = vweird.f32 %v909_v18 }
0x13ad   :  { %1529 = vtanh.f32 %v904_v13 }
0x13ae   :  { %v922_v30 = vor.u32 1.1754944e-38, %v921_v23  ;;  %vm920_vm15 = vcmp.eq.f32.partialorder %v919_v26, 8.507059e+37 }
0x13b2   :  { %v1528_v19 = vpop.eup %1527 }
0x13b3   :  { %v911_v20 = vmul.f32 %v1528_v19, %v909_v18  ;;  %vm916_vm12 = vweird.f32 %v1528_v19  ;;  %v1530_v32 = vpop.eup %1529 }
0x13b4   :  { %vm917_vm14 = vmor %vm915_vm13, %vm916_vm12 }
0x13b5   :  { %v912_v21 = vsub.f32 1.0, %v911_v20 }
0x13b7   :  { %v913_v24 = vmul.f32 %v1528_v19, %v912_v21 }
0x13b9   :  { %v914_v16 = vadd.f32 %v1528_v19, %v913_v24 }
0x13bb   :  { %v918_v31 = vsel %vm917_vm14, %v1528_v19, %v914_v16 }
0x13bc   :  { %v923_v33 = vsel %vm920_vm15, %v922_v30, %v918_v31 }
0x13bd   :  { %v925_v34 = vsel %vm1722_vm4, %v1530_v32, %v923_v33 }
0x13be   :  { %928 = vrot.lane.b32.xlu1 %v925_v34, %s1613_s29  ;;  %v926_v40 = vmul.f32 %v925_v34, %v876_v62 }
0x1430   :  { %v929_v36 = vpop.permute.xlu1 %928 }
0x1431   :  { %v931_v37 = vmul.f32 %v929_v36, %v925_v34 }
0x1433   :  { %933 = vrot.lane.b32.xlu2 %v931_v37, %s1614_s30 }
0x148d   :  { %v934_v7 = vpop.permute.xlu2 %933 }
0x148e   :  { %v936_v41 = vadd.f32 %v934_v7, %v926_v40 }
0x1490   :  { %1531 = vtanh.f32 %v936_v41 }
0x1496   :  { %v1532_v43 = vpop.eup %1531 }
0x1497   :  { %939 = vrot.lane.b32.xlu0 %v1532_v43, %s1613_s29 }
0x1509   :  { %v940_v44 = vpop.permute.xlu0 %939 }
0x150a   :  { %v942_v45 = vmul.f32 %v940_v44, %v925_v34 }
0x150c   :  { %v944_v8 = vpack.c.bf16 %v942_v45, %v942_v45  ;;  %v1585_v45 = vld [vmem:[%s2010_s3] ss:$0 sm:$0xff] }
0x150e   :  { %946 = vrot.lane.b32.xlu1 %v944_v8, %s1614_s30  ;;  %v121_v8 = vadd.f32 %v1585_v45, %v1909_v6 }
0x1580   :  { %v947_v46 = vpop.permute.xlu1 %946 }
0x1581   :  { %1413 = vmatmul.msk.bf16.vlgmr.msra.gmra.mxu1 %vm81_vm0, %v947_v46  ;;  %v628_v46 = vadd.f32 %v1892_v35, %v121_v8 }
0x1583   :  { %v1387_v48 = vmul.f32 -1.442695, %v628_v46 }
0x15fe   :  { %v960_v28 = vpop.f32.mrf.mxu1 }
0x15ff   :  { %v964_v29 = vadd.f32 %v960_v28, %v738_v49 }
0x1601   :  { %v1414_v50 = vmul.f32 -1.442695, %v964_v29 }
0x1603   :  { %1533 = vpow2.f32 %v1414_v50 }
0x1606   :  { %v962_v51 = vpop.f32.mrf.mxu1 }
0x1609   :  { %v1534_v52 = vpop.eup %1533 }
0x160a   :  { %v969_v53 = vadd.f32 1.0, %v1534_v52 }
0x160c   :  { %1535 = vrcp.f32 %v969_v53  ;;  %v981_v57 = vand.u32 2147483648, %v969_v53  ;;  %v979_v59 = vand.u32 2147483647, %v969_v53  ;;  %vm975_vm2 = vweird.f32 %v969_v53 }
0x160d   :  { %1537 = vtanh.f32 %v964_v29 }
0x160e   :  { %v982_v61 = vor.u32 1.1754944e-38, %v981_v57  ;;  %vm980_vm5 = vcmp.eq.f32.partialorder %v979_v59, 8.507059e+37 }
0x1612   :  { %v1536_v54 = vpop.eup %1535 }
0x1613   :  { %v971_v55 = vmul.f32 %v1536_v54, %v969_v53  ;;  %vm976_vm1 = vweird.f32 %v1536_v54  ;;  %v1538_v63 = vpop.eup %1537 }
0x1614   :  { %vm977_vm3 = vmor %vm975_vm2, %vm976_vm1 }
0x1615   :  { %v972_v56 = vsub.f32 1.0, %v971_v55 }
0x1617   :  { %v973_v58 = vmul.f32 %v1536_v54, %v972_v56 }
0x1619   :  { %v974_v60 = vadd.f32 %v1536_v54, %v973_v58 }
0x161b   :  { %v978_v62 = vsel %vm977_vm3, %v1536_v54, %v974_v60 }
0x161c   :  { %v983_v0 = vsel %vm980_vm5, %v982_v61, %v978_v62 }
0x161d   :  { %v985_v42 = vsel %vm1722_vm4, %v1538_v63, %v983_v0 }
0x161e   :  { %988 = vrot.lane.b32.xlu2 %v985_v42, %s1613_s29  ;;  %v986_v4 = vmul.f32 %v985_v42, %v936_v41 }
0x1626   :  { %467 = vrot.lane.b32.xlu2 %v1795_v47, %s1614_s30 }
0x1678   :  { %v989_v1 = vpop.permute.xlu2 %988 }
0x1679   :  { %v991_v2 = vmul.f32 %v989_v1, %v985_v42 }
0x167b   :  { %993 = vrot.lane.b32.xlu0 %v991_v2, %s1614_s30 }
0x1680   :  { %v468_v3 = vpop.permute.xlu2 %467 }
0x1681   :  { %471 = vst.msk [vmem:[#allocation3 + $0x20] sm:$0xff] %vm81_vm0, %v468_v3 }
0x1683   :  { %534 = vrot.lane.b32.xlu0 %v1823_v22, %s1614_s30 }
0x1688   :  { %v686_v47 = vld [vmem:[#allocation3 + $0x20] sm:$0xff] }
0x16ed   :  { %v994_v5 = vpop.permute.xlu0 %993 }
0x16ee   :  { %v1929_v14 = vadd.f32 %v994_v5, %v986_v4 }
0x16f0   :  { %1539 = vtanh.f32 %v1929_v14 }
0x16f5   :  { %v535_v9 = vpop.permute.xlu0 %534 }
0x16f6   :  { %v1540_v11 = vpop.eup %1539  ;;  %538 = vst.msk [vmem:[#allocation3 + $0x28] sm:$0xff] %vm81_vm0, %v535_v9 }
0x16f7   :  { %999 = vrot.lane.b32.xlu1 %v1540_v11, %s1613_s29 }
0x16fd   :  { %v687_v12 = vld [vmem:[#allocation3 + $0x28] sm:$0xff] }
0x16fe   :  { %v692_v13 = vpack.c.bf16 %v687_v12, %v686_v47 }
0x1700   :  { %1398 = vmatmul.msk.bf16.gmra.mxu3 %vm81_vm0, %v692_v13 }
0x1769   :  { %v1000_v39 = vpop.permute.xlu1 %999 }
0x176a   :  { %v1002_v15 = vmul.f32 %v1000_v39, %v985_v42 }
0x176c   :  { %v1004_v22 = vpack.c.bf16 %v1002_v15, %v1002_v15 }
0x176e   :  { %1006 = vrot.lane.b32.xlu1 %v1004_v22, %s1614_s30 }
0x1783   :  { %v740_v18 = vpop.f32.mrf.mxu3 }
0x1784   :  { %v741_v19 = vadd.f32 %v1863_v38, %v740_v18 }
0x178b   :  { %v742_v9 = vpop.f32.mrf.mxu3 }
0x17e0   :  { %v1007_v17 = vpop.permute.xlu1 %1006 }
0x17e1   :  { %1415 = vmatmul.msk.bf16.vlgmr.msra.gmra.mxu2 %vm81_vm0, %v1007_v17 }
0x1864   :  { %v1020_v20 = vpop.f32.mrf.mxu2 }
0x1865   :  { %v1024_v21 = vadd.f32 %v1020_v20, %v741_v19 }
0x1867   :  { %v1416_v23 = vmul.f32 -1.442695, %v1024_v21 }
0x1869   :  { %1541 = vpow2.f32 %v1416_v23 }
0x186c   :  { %v1022_v24 = vpop.f32.mrf.mxu2 }
0x186f   :  { %v1542_v26 = vpop.eup %1541 }
0x1870   :  { %v1029_v16 = vadd.f32 1.0, %v1542_v26 }
0x1872   :  { %1543 = vrcp.f32 %v1029_v16  ;;  %v1041_v33 = vand.u32 2147483648, %v1029_v16  ;;  %v1039_v36 = vand.u32 2147483647, %v1029_v16  ;;  %vm1035_vm7 = vweird.f32 %v1029_v16 }
0x1873   :  { %1545 = vtanh.f32 %v1024_v21 }
0x1874   :  { %v1042_v40 = vor.u32 1.1754944e-38, %v1041_v33  ;;  %vm1040_vm9 = vcmp.eq.f32.partialorder %v1039_v36, 8.507059e+37  ;;  %1547 = vpow2.f32 %v1387_v48 }
0x1878   :  { %v1544_v30 = vpop.eup %1543 }
0x1879   :  { %v1031_v31 = vmul.f32 %v1544_v30, %v1029_v16  ;;  %vm1036_vm6 = vweird.f32 %v1544_v30  ;;  %v1546_v41 = vpop.eup %1545 }
0x187a   :  { %vm1037_vm8 = vmor %vm1035_vm7, %vm1036_vm6  ;;  %v1548_v49 = vpop.eup %1547 }
0x187b   :  { %v1032_v32 = vsub.f32 1.0, %v1031_v31  ;;  %v633_v28 = vadd.f32 1.0, %v1548_v49 }
0x187d   :  { %v1033_v34 = vmul.f32 %v1544_v30, %v1032_v32  ;;  %1549 = vrcp.f32 %v633_v28  ;;  %v645_v56 = vand.u32 2147483648, %v633_v28  ;;  %vm639_vm11 = vweird.f32 %v633_v28 }
0x187e   :  { %v643_v57 = vand.u32 2147483647, %v633_v28  ;;  %1551 = vtanh.f32 %v628_v46 }
0x187f   :  { %v1034_v37 = vadd.f32 %v1544_v30, %v1033_v34  ;;  %v646_v6 = vor.u32 1.1754944e-38, %v645_v56 }
0x1880   :  { %vm644_vm13 = vcmp.eq.f32.partialorder %v643_v57, 8.507059e+37 }
0x1881   :  { %v1038_v7 = vsel %vm1037_vm8, %v1544_v30, %v1034_v37 }
0x1882   :  { %v1043_v43 = vsel %vm1040_vm9, %v1042_v40, %v1038_v7 }
0x1883   :  { %v1045_v44 = vsel %vm1722_vm4, %v1546_v41, %v1043_v43  ;;  %v1550_v29 = vpop.eup %1549 }
0x1884   :  { %1048 = vrot.lane.b32.xlu2 %v1045_v44, %s1613_s29  ;;  %v635_v50 = vmul.f32 %v1550_v29, %v633_v28  ;;  %vm640_vm10 = vweird.f32 %v1550_v29  ;;  %v1552_v59 = vpop.eup %1551  ;;  %v1046_v61 = vmul.f32 %v1045_v44, %v1929_v14  ;;  %v743_v14 = vadd.f32 %v1863_v38, %v742_v9 }
0x1885   :  { %vm641_vm12 = vmor %vm639_vm11, %vm640_vm10 }
0x1886   :  { %v636_v51 = vsub.f32 1.0, %v635_v50 }
0x1888   :  { %v637_v52 = vmul.f32 %v1550_v29, %v636_v51 }
0x188a   :  { %v638_v54 = vadd.f32 %v1550_v29, %v637_v52 }
0x188c   :  { %v642_v35 = vsel %vm641_vm12, %v1550_v29, %v638_v54 }
0x188d   :  { %v647_v58 = vsel %vm644_vm13, %v646_v6, %v642_v35 }
0x188e   :  { %v649_v60 = vsel %vm1722_vm4, %v1552_v59, %v647_v58 }
0x188f   :  { %v650_v24 = vmul.f32 %v649_v60, %v1875_v10 }
0x18de   :  { %v1049_v53 = vpop.permute.xlu2 %1048 }
0x18df   :  { %v1051_v55 = vmul.f32 %v1049_v53, %v1045_v44 }
0x18e1   :  { %1053 = vrot.lane.b32.xlu0 %v1051_v55, %s1614_s30 }
0x18e9   :  { %652 = vrot.lane.b32.xlu0 %v649_v60, %s1613_s29 }
0x1953   :  { %v1054_v62 = vpop.permute.xlu0 %1053 }
0x1954   :  { %v1056_v63 = vadd.f32 %v1054_v62, %v1046_v61 }
0x1956   :  { %1553 = vtanh.f32 %v1056_v63 }
0x195b   :  { %v653_v3 = vpop.permute.xlu0 %652 }
0x195c   :  { %v1554_v0 = vpop.eup %1553  ;;  %v655_v4 = vmul.f32 %v653_v3, %v649_v60 }
0x195d   :  { %1059 = vrot.lane.b32.xlu1 %v1554_v0, %s1613_s29 }
0x19cf   :  { %v1060_v42 = vpop.permute.xlu1 %1059 }
0x19d0   :  { %v1062_v1 = vmul.f32 %v1060_v42, %v1045_v44 }
0x19d2   :  { %v1064_v2 = vpack.c.bf16 %v1062_v1, %v1062_v1 }
0x19d4   :  { %1066 = vrot.lane.b32.xlu2 %v1064_v2, %s1614_s30 }
0x19dc   :  { %657 = vrot.lane.b32.xlu2 %v655_v4, %s1614_s30 }
0x1a2e   :  { %v1067_v5 = vpop.permute.xlu2 %1066 }
0x1a2f   :  { %1417 = vmatmul.msk.bf16.vlgmr.msra.gmra.mxu0 %vm81_vm0, %v1067_v5 }
0x1a36   :  { %v658_v23 = vpop.permute.xlu2 %657 }
0x1a37   :  { %v660_v30 = vadd.f32 %v658_v23, %v650_v24 }
0x1aac   :  { %v1080_v11 = vpop.f32.mrf.mxu0 }
0x1aad   :  { %v1084_v47 = vadd.f32 %v1080_v11, %v743_v14 }
0x1aaf   :  { %v1418_v12 = vmul.f32 -1.442695, %v1084_v47 }
0x1ab1   :  { %1555 = vpow2.f32 %v1418_v12 }
0x1ab4   :  { %v1082_v13 = vpop.f32.mrf.mxu0 }
0x1ab7   :  { %v1556_v39 = vpop.eup %1555 }
0x1ab8   :  { %v1089_v15 = vadd.f32 1.0, %v1556_v39 }
0x1aba   :  { %1557 = vrcp.f32 %v1089_v15  ;;  %v1101_v19 = vand.u32 2147483648, %v1089_v15  ;;  %v1099_v21 = vand.u32 2147483647, %v1089_v15  ;;  %vm1095_vm15 = vweird.f32 %v1089_v15 }
0x1abb   :  { %1559 = vtanh.f32 %v1084_v47 }
0x1abc   :  { %v1102_v16 = vor.u32 1.1754944e-38, %v1101_v19  ;;  %vm1100_vm2 = vcmp.eq.f32.partialorder %v1099_v21, 8.507059e+37  ;;  %1561 = vtanh.f32 %v660_v30 }
0x1ac0   :  { %v1558_v22 = vpop.eup %1557 }
0x1ac1   :  { %v1091_v17 = vmul.f32 %v1558_v22, %v1089_v15  ;;  %vm1096_vm14 = vweird.f32 %v1558_v22  ;;  %v1560_v32 = vpop.eup %1559 }
0x1ac2   :  { %vm1097_vm1 = vmor %vm1095_vm15, %vm1096_vm14  ;;  %v1562_v36 = vpop.eup %1561 }
0x1ac3   :  { %v1092_v18 = vsub.f32 1.0, %v1091_v17 }
0x1ac5   :  { %v1093_v20 = vmul.f32 %v1558_v22, %v1092_v18 }
0x1ac7   :  { %v1094_v26 = vadd.f32 %v1558_v22, %v1093_v20 }
0x1ac9   :  { %v1098_v31 = vsel %vm1097_vm1, %v1558_v22, %v1094_v26  ;;  %vm1335_vm1 = vcmask 60416  }
0x1aca   :  { %v1103_v33 = vsel %vm1100_vm2, %v1102_v16, %v1098_v31 }
0x1acb   :  { %v1105_v34 = vsel %vm1722_vm4, %v1560_v32, %v1103_v33 }
0x1acc   :  { %1108 = vrot.lane.b32.xlu1 %v1105_v34, %s1613_s29  ;;  %v1106_v41 = vmul.f32 %v1105_v34, %v1056_v63 }
0x1ad4   :  { %663 = vrot.lane.b32.xlu1 %v1562_v36, %s1613_s29 }
0x1b3e   :  { %v1109_v37 = vpop.permute.xlu1 %1108 }
0x1b3f   :  { %v1111_v10 = vmul.f32 %v1109_v37, %v1105_v34 }
0x1b41   :  { %1113 = vrot.lane.b32.xlu0 %v1111_v10, %s1614_s30 }
0x1b46   :  { %v664_v40 = vpop.permute.xlu1 %663 }
0x1b47   :  { %v666_v7 = vmul.f32 %v664_v40, %v649_v60 }
0x1b49   :  { %601 = vrot.lane.b32.xlu0 %v1880_v27, %s1614_s30  ;;  %668 = vrot.lane.b32.xlu1 %v666_v7, %s1614_s30 }
0x1bb3   :  { %v1114_v43 = vpop.permute.xlu0 %1113 }
0x1bb4   :  { %v1116_v44 = vadd.f32 %v1114_v43, %v1106_v41 }
0x1bb6   :  { %1563 = vtanh.f32 %v1116_v44 }
0x1bbb   :  { %v602_v45 = vpop.permute.xlu0 %601  ;;  %v669_v8 = vpop.permute.xlu1 %668 }
0x1bbc   :  { %v1564_v46 = vpop.eup %1563  ;;  %605 = vst.msk [vmem:[#allocation3 + $0x30] sm:$0xff] %vm81_vm0, %v602_v45  ;;  %v1451_v45 = vld [vmem:[%s2015_s8] ss:$0 sm:$0xff] }
0x1bbd   :  { %672 = vst.msk [vmem:[#allocation3 + $0x38] sm:$0xff] %vm81_vm0, %v669_v8  ;;  %1119 = vrot.lane.b32.xlu2 %v1564_v46, %s1613_s29 }
0x1bc3   :  { %v688_v48 = vld [vmem:[#allocation3 + $0x30] sm:$0xff] }
0x1bc4   :  { %v689_v49 = vld [vmem:[#allocation3 + $0x38] sm:$0xff] }
0x1bc5   :  { %v693_v28 = vpack.c.bf16 %v689_v49, %v688_v48  ;;  %v1616_v49 = vmov 4.0  }
0x1bc7   :  { %1399 = vmatmul.msk.bf16.gmra.mxu3 %vm81_vm0, %v693_v28 }
0x1c17   :  { %v1120_v27 = vpop.permute.xlu2 %1119 }
0x1c18   :  { %v1122_v29 = vmul.f32 %v1120_v27, %v1105_v34 }
0x1c1a   :  { %v1124_v50 = vpack.c.bf16 %v1122_v29, %v1122_v29 }
0x1c1c   :  { %1126 = vrot.lane.b32.xlu2 %v1124_v50, %s1614_s30 }
0x1c4a   :  { %v745_v52 = vpop.f32.mrf.mxu3 }
0x1c4b   :  { %v746_v53 = vadd.f32 %v1863_v38, %v745_v52 }
0x1c52   :  { %v747_v17 = vpop.f32.mrf.mxu3 }
0x1c53   :  { %v748_v18 = vadd.f32 %v1863_v38, %v747_v17 }
0x1c76   :  { %v1127_v51 = vpop.permute.xlu2 %1126 }
0x1c77   :  { %1419 = vmatmul.msk.bf16.vlgmr.msrb.gmra.mxu1 %vm81_vm0, %v1127_v51 }
0x1cf4   :  { %v1140_v54 = vpop.f32.mrf.mxu1 }
0x1cf5   :  { %v1144_v55 = vadd.f32 %v1140_v54, %v746_v53 }
0x1cf7   :  { %v1420_v56 = vmul.f32 -1.442695, %v1144_v55 }
0x1cf9   :  { %1565 = vpow2.f32 %v1420_v56 }
0x1cfc   :  { %v1142_v57 = vpop.f32.mrf.mxu1 }
0x1cff   :  { %v1566_v35 = vpop.eup %1565 }
0x1d00   :  { %v1149_v6 = vadd.f32 1.0, %v1566_v35 }
0x1d02   :  { %1567 = vrcp.f32 %v1149_v6  ;;  %v1161_v61 = vand.u32 2147483648, %v1149_v6  ;;  %v1159_v63 = vand.u32 2147483647, %v1149_v6  ;;  %vm1155_vm5 = vweird.f32 %v1149_v6 }
0x1d03   :  { %1569 = vtanh.f32 %v1144_v55 }
0x1d04   :  { %v1162_v42 = vor.u32 1.1754944e-38, %v1161_v61  ;;  %vm1160_vm7 = vcmp.eq.f32.partialorder %v1159_v63, 8.507059e+37 }
0x1d08   :  { %v1568_v58 = vpop.eup %1567 }
0x1d09   :  { %v1151_v59 = vmul.f32 %v1568_v58, %v1149_v6  ;;  %vm1156_vm3 = vweird.f32 %v1568_v58  ;;  %v1570_v2 = vpop.eup %1569 }
0x1d0a   :  { %vm1157_vm6 = vmor %vm1155_vm5, %vm1156_vm3 }
0x1d0b   :  { %v1152_v60 = vsub.f32 1.0, %v1151_v59 }
0x1d0d   :  { %v1153_v62 = vmul.f32 %v1568_v58, %v1152_v60 }
0x1d0f   :  { %v1154_v0 = vadd.f32 %v1568_v58, %v1153_v62 }
0x1d11   :  { %v1158_v1 = vsel %vm1157_vm6, %v1568_v58, %v1154_v0 }
0x1d12   :  { %v1163_v3 = vsel %vm1160_vm7, %v1162_v42, %v1158_v1 }
0x1d13   :  { %v1165_v4 = vsel %vm1722_vm4, %v1570_v2, %v1163_v3 }
0x1d14   :  { %1168 = vrot.lane.b32.xlu0 %v1165_v4, %s1613_s29  ;;  %v1166_v14 = vmul.f32 %v1165_v4, %v1116_v44  ;;  %v1450_v44 = vld [vmem:[%s2014_s7] ss:$0 sm:$0xff] }
0x1d86   :  { %v1169_v5 = vpop.permute.xlu0 %1168 }
0x1d87   :  { %v1171_v9 = vmul.f32 %v1169_v5, %v1165_v4  ;;  %v1441_v5 = vld [vmem:[%s2016_s9 + $0x8] sm:$0xff] }
0x1d88   :  { %1328 = vmatpush.bf16.msrb.mxu0 %v1441_v5 }
0x1d89   :  { %1173 = vrot.lane.b32.xlu1 %v1171_v9, %s1614_s30 }
0x1dfb   :  { %v1174_v11 = vpop.permute.xlu1 %1173 }
0x1dfc   :  { %v1176_v47 = vadd.f32 %v1174_v11, %v1166_v14  ;;  %v1440_v14 = vld [vmem:[%s2016_s9] sm:$0xff] }
0x1dfd   :  { %1329 = vmatpush.bf16.msrb.mxu0 %v1440_v14 }
0x1dfe   :  { %1571 = vtanh.f32 %v1176_v47 }
0x1e04   :  { %v1572_v12 = vpop.eup %1571 }
0x1e05   :  { %1179 = vrot.lane.b32.xlu2 %v1572_v12, %s1613_s29 }
0x1e5f   :  { %v1180_v13 = vpop.permute.xlu2 %1179 }
0x1e60   :  { %v1182_v39 = vmul.f32 %v1180_v13, %v1165_v4 }
0x1e62   :  { %v1184_v15 = vpack.c.bf16 %v1182_v39, %v1182_v39 }
0x1e64   :  { %1186 = vrot.lane.b32.xlu0 %v1184_v15, %s1614_s30 }
0x1ed6   :  { %v1187_v22 = vpop.permute.xlu0 %1186 }
0x1ed7   :  { %1421 = vmatmul.msk.bf16.vlgmr.msrb.gmra.mxu2 %vm81_vm0, %v1187_v22 }
0x1f5a   :  { %v1200_v19 = vpop.f32.mrf.mxu2 }
0x1f5b   :  { %v1204_v20 = vadd.f32 %v1200_v19, %v748_v18 }
0x1f5d   :  { %v1422_v21 = vmul.f32 -1.442695, %v1204_v20 }
0x1f5f   :  { %1573 = vpow2.f32 %v1422_v21 }
0x1f62   :  { %v1202_v23 = vpop.f32.mrf.mxu2 }
0x1f65   :  { %v1574_v24 = vpop.eup %1573 }
0x1f66   :  { %v1209_v26 = vadd.f32 1.0, %v1574_v24 }
0x1f68   :  { %1575 = vrcp.f32 %v1209_v26  ;;  %v1221_v32 = vand.u32 2147483648, %v1209_v26  ;;  %v1219_v34 = vand.u32 2147483647, %v1209_v26  ;;  %vm1215_vm9 = vweird.f32 %v1209_v26 }
0x1f69   :  { %1577 = vtanh.f32 %v1204_v20 }
0x1f6a   :  { %v1222_v38 = vor.u32 1.1754944e-38, %v1221_v32  ;;  %vm1220_vm11 = vcmp.eq.f32.partialorder %v1219_v34, 8.507059e+37 }
0x1f6e   :  { %v1576_v16 = vpop.eup %1575 }
0x1f6f   :  { %v1211_v30 = vmul.f32 %v1576_v16, %v1209_v26  ;;  %vm1216_vm8 = vweird.f32 %v1576_v16  ;;  %v1578_v10 = vpop.eup %1577 }
0x1f70   :  { %vm1217_vm10 = vmor %vm1215_vm9, %vm1216_vm8 }
0x1f71   :  { %v1212_v31 = vsub.f32 1.0, %v1211_v30 }
0x1f73   :  { %v1213_v33 = vmul.f32 %v1576_v16, %v1212_v31 }
0x1f75   :  { %v1214_v36 = vadd.f32 %v1576_v16, %v1213_v33 }
0x1f77   :  { %v1218_v37 = vsel %vm1217_vm10, %v1576_v16, %v1214_v36  ;;  %v1452_v16 = vld [vmem:[%s2017_s10] ss:$0 sm:$0xff] }
0x1f78   :  { %v1223_v40 = vsel %vm1220_vm11, %v1222_v38, %v1218_v37 }
0x1f79   :  { %v1225_v7 = vsel %vm1722_vm4, %v1578_v10, %v1223_v40  ;;  %vm1243_vm4 = vcmask 1044224  }
0x1f7a   :  { %1228 = vrot.lane.b32.xlu1 %v1225_v7, %s1613_s29  ;;  %v1226_v8 = vmul.f32 %v1225_v7, %v1176_v47 }
0x1f82   :  { %1284 = vrot.lane.b32.xlu1 %v1450_v44, %s1615_s16 }
0x1fec   :  { %v1229_v41 = vpop.permute.xlu1 %1228 }
0x1fed   :  { %v1231_v43 = vmul.f32 %v1229_v41, %v1225_v7 }
0x1fef   :  { %1233 = vrot.lane.b32.xlu2 %v1231_v43, %s1614_s30 }
0x1ff4   :  { %v1285_v17 = vpop.permute.xlu1 %1284 }
0x1ff7   :  { %1291 = vrot.lane.b32.xlu2 %v1451_v45, %s1615_s16 }
0x2049   :  { %v1234_v25 = vpop.permute.xlu2 %1233 }
0x204a   :  { %v1236_v46 = vadd.f32 %v1234_v25, %v1226_v8 }
0x204c   :  { %1579 = vtanh.f32 %v1236_v46 }
0x204d   :  { %1581 = vrcp.f32 %v1616_v49 }
0x2051   :  { %v1292_v20 = vpop.permute.xlu2 %1291 }
0x2052   :  { %v1580_v48 = vpop.eup %1579 }
0x2053   :  { %1239 = vrot.lane.b32.xlu0 %v1580_v48, %s1613_s29  ;;  %v1582_v28 = vpop.eup %1581 }
0x2054   :  { %v1252_v27 = vmul.f32 4.0, %v1582_v28  ;;  %vm1256_vm12 = vweird.f32 %v1582_v28 }
0x2056   :  { %v1253_v50 = vsub.f32 1.0, %v1252_v27 }
0x2058   :  { %v1254_v54 = vmul.f32 %v1582_v28, %v1253_v50 }
0x205a   :  { %v1255_v57 = vadd.f32 %v1582_v28, %v1254_v54 }
0x205c   :  { %v1257_v58 = vsel %vm1256_vm12, %v1582_v28, %v1255_v57 }
0x20c5   :  { %v1240_v29 = vpop.permute.xlu0 %1239 }
0x20c6   :  { %v1242_v51 = vmul.f32 %v1240_v29, %v1225_v7 }
0x20c8   :  { %v1244_v52 = vsel %vm1243_vm4, %v1242_v51, 0.0 }
0x20c9   :  { %v1245_v53 = vrot.slane %v1244_v52, 4 }
0x20cb   :  { %v1246_v55 = vadd.f32 %v1245_v53, %v1244_v52 }
0x20cd   :  { %v1247_v56 = vrot.slane %v1246_v55, 2 }
0x20cf   :  { %v1248_v35 = vadd.f32 %v1247_v56, %v1246_v55 }
0x20d1   :  { %v1249_v6 = vrot.slane %v1248_v35, 1 }
0x20d3   :  { %v1250_v59 = vadd.f32 %v1249_v6, %v1248_v35 }
0x20d5   :  { %v1258_v60 = vmul.f32 %v1257_v58, %v1250_v59 }
0x20d7   :  { %v1259_v61 = vsub.f32 %v1242_v51, %v1258_v60 }
0x20d9   :  { %v1260_v62 = vmul.f32 %v1259_v61, %v1259_v61 }
0x20db   :  { %v1261_v63 = vsel %vm1243_vm4, %v1260_v62, 0.0 }
0x20dc   :  { %v1262_v0 = vrot.slane %v1261_v63, 4 }
0x20de   :  { %v1263_v42 = vadd.f32 %v1262_v0, %v1261_v63 }
0x20e0   :  { %v1264_v1 = vrot.slane %v1263_v42, 2 }
0x20e2   :  { %v1265_v2 = vadd.f32 %v1264_v1, %v1263_v42 }
0x20e4   :  { %v1266_v3 = vrot.slane %v1265_v2, 1 }
0x20e6   :  { %v1267_v4 = vadd.f32 %v1266_v3, %v1265_v2 }
0x20e8   :  { %v1268_v9 = vmul.f32 %v1267_v4, %v1257_v58 }
0x20ea   :  { %v1269_v11 = vadd.f32 1e-05, %v1268_v9 }
0x20ec   :  { %1583 = vrsqrt.f32 %v1269_v11  ;;  %vm1276_vm14 = vweird.f32 %v1269_v11 }
0x20f2   :  { %v1584_v47 = vpop.eup %1583 }
0x20f3   :  { %v1271_v12 = vmul.f32 %v1584_v47, %v1269_v11  ;;  %vm1277_vm13 = vweird.f32 %v1584_v47 }
0x20f4   :  { %vm1278_vm15 = vmor %vm1276_vm14, %vm1277_vm13 }
0x20f5   :  { %v1272_v13 = vmul.f32 %v1584_v47, %v1271_v12 }
0x20f7   :  { %v1273_v39 = vmul.f32 0.5, %v1272_v13 }
0x20f9   :  { %v1274_v15 = vsub.f32 1.5, %v1273_v39 }
0x20fb   :  { %v1275_v22 = vmul.f32 %v1584_v47, %v1274_v15 }
0x20fd   :  { %v1279_v18 = vsel %vm1278_vm15, %v1584_v47, %v1275_v22 }
0x20fe   :  { %v1280_v19 = vmul.f32 %v1279_v18, %v1259_v61 }
0x2100   :  { %v1287_v21 = vmul.f32 %v1285_v17, %v1280_v19 }
0x2102   :  { %v1294_v23 = vadd.f32 %v1292_v20, %v1287_v21 }
0x2104   :  { %v1295_v24 = vpack.c.bf16 %v1294_v23, %v1294_v23 }
0x2106   :  { %1305 = vrot.lane.b32.xlu0 %v1295_v24, %s1614_s30 }
0x2178   :  { %v1306_v26 = vpop.permute.xlu0 %1305 }
0x2179   :  { %1431 = vmatmul.msk.bf16.vlgmr.msrb.gmra.mxu0 %vm81_vm0, %v1306_v26 }
0x21f6   :  { %v1331_v30 = vpop.f32.mrf.mxu0 }
0x21f7   :  { %v1332_v31 = vadd.f32 %v1452_v16, %v1331_v30 }
0x21f9   :  { %1336 = vst.msk [vmem:[#allocation4] sm:$0xf] %vm1335_vm1, %v1332_v31 }
0x21fa   :  { %1347 = dma.vmem_to_hbm [thread:$0]  %s1343_s20, 64, %s1345_s23, [#allocation5]  }
0x21fe   :  { %v1333_v32 = vpop.f32.mrf.mxu0 }
0x21ff   :  { %1610 = dma.done.wait [#allocation5], 64  }
0x2200   :  { %1611 = vsyncadd [#allocation5], 4294967232 }
0x2201   :  { %1352 = vsyncpa [#allocation5], 1 }

</bundles_post_ra>
